<compile_context>
chip_gen: v5e
topology: v5e:2x2
jax: 0.10.0
libtpu: 0.0.40
codegen_flags: <defaults>
</compile_context>

<pallas_src>
import jax
import jax.numpy as jnp
from jax.experimental import pallas as pl
from jax.experimental.pallas import tpu as pltpu


_VMEM_SPEC = pl.BlockSpec(memory_space=pltpu.MemorySpace.VMEM)


# --------------------------------------------------------------------------- packing
def _pad_rows(a, mult=8):
    pad = (-a.shape[0]) % mult
    if pad:
        a = jnp.pad(a, ((0, pad), (0, 0)))
    return a


def _scale_g(w, H):
    # tanh(x) = 2*sigmoid(2x) - 1  =>  pre-scale the g-gate column block by 2.
    return w.at[..., 2 * H:3 * H].multiply(2.0)


def _pack_weights(params, hidden_dim):
    """Pack all layer weights + FC head into one (R, 4H) f32 array (8-row aligned)."""
    H = hidden_dim
    four_h = 4 * H
    blocks, offsets = [], {}
    off = 0

    def add(name, arr):
        nonlocal off
        arr = _pad_rows(arr.astype(jnp.float32))
        offsets[name] = off
        off += arr.shape[0]
        blocks.append(arr)

    lp0 = params["layers"][0]
    add("w_ih0", _scale_g(lp0["w_ih_t"], H))          # (Din, 4H)
    add("w_hh0", _scale_g(lp0["w_hh_t"], H))          # (H,   4H)
    add("b0", _scale_g(lp0["bias"], H))               # (1,   4H)
    for l in range(1, len(params["layers"])):
        lp = params["layers"][l]
        wcat = jnp.concatenate([lp["w_ih_t"], lp["w_hh_t"]], axis=0)   # (2H, 4H)
        add(f"wcat{l}", _scale_g(wcat, H))
        add(f"b{l}", _scale_g(lp["bias"], H))
    fc_row = jnp.zeros((1, four_h), jnp.float32)
    fc_row = fc_row.at[0, :H].set(params["w_fc_t"][:, 0])
    fc_row = fc_row.at[0, H].set(params["b_fc"][0, 0])
    add("fc", fc_row)                                  # (1, 4H): lanes 0:H = w_fc, lane H = b_fc

    return jnp.concatenate(blocks, axis=0), offsets


# ----------------------------------------------------------------------------- kernel
def _make_fused_kernel(num_layers, T, B, H, Din, offsets):
    """Build the fused kernel for static (num_layers, T, padded-B, H, Din)."""

    def cell(gates, c):
        # gates: (B, 4H), order i,f,g,o; g-gate pre-activation already scaled by 2.
        sig = jax.nn.sigmoid(gates)                    # single full-width EUP pass
        i_g = sig[:, 0 * H:1 * H]
        f_g = sig[:, 1 * H:2 * H]
        g_g = 2.0 * sig[:, 2 * H:3 * H] - 1.0          # == tanh(unscaled pre-activation)
        o_g = sig[:, 3 * H:4 * H]
        c_new = f_g * c + i_g * g_g
        h_new = o_g * jnp.tanh(c_new)
        return h_new, c_new

    def kernel(x_ref, w_ref, out_ref):
        # ----- layer-0 weights & hoisted input projection (one batched matmul) -----
        o = offsets["w_ih0"]
        w_ih0 = w_ref[o:o + Din, :]                    # (Din, 4H)
        o = offsets["w_hh0"]
        w_hh0 = w_ref[o:o + H, :]                      # (H,   4H)
        o = offsets["b0"]
        b0 = w_ref[o:o + 1, :]                         # (1,   4H)
        gates0_x = (
            jnp.dot(x_ref[...], w_ih0, preferred_element_type=jnp.float32) + b0
        )                                              # (T*B, 4H)

        wcats, biases = [], []
        for l in range(1, num_layers):
            o = offsets[f"wcat{l}"]
            wcats.append(w_ref[o:o + 2 * H, :])        # (2H, 4H)
            o = offsets[f"b{l}"]
            biases.append(w_ref[o:o + 1, :])           # (1,  4H)

        h = [jnp.zeros((B, H), jnp.float32) for _ in range(num_layers)]
        c = [jnp.zeros((B, H), jnp.float32) for _ in range(num_layers)]

        # ----- wavefront over time: layer 0 step t feeds layer 1 step t ------------
        for t in range(T):                             # static, fully unrolled
            g0 = gates0_x[t * B:(t + 1) * B, :] + jnp.dot(
                h[0], w_hh0, preferred_element_type=jnp.float32
            )
            h[0], c[0] = cell(g0, c[0])
            for l in range(1, num_layers):
                inp = jnp.concatenate([h[l - 1], h[l]], axis=1)      # (B, 2H)
                gl = jnp.dot(inp, wcats[l - 1], preferred_element_type=jnp.float32)
                gl = gl + biases[l - 1]
                h[l], c[l] = cell(gl, c[l])

        # ----- FC epilogue on h_{T-1} of the last layer (lane-reduce, one store) ---
        o = offsets["fc"]
        fc_row = w_ref[o:o + 1, :]                     # (1, 4H)
        w_fc = fc_row[:, 0:H]                          # (1, H)
        b_fc = fc_row[:, H:H + 1]                      # (1, 1)
        out_ref[...] = (
            jnp.sum(h[num_layers - 1] * w_fc, axis=1, keepdims=True) + b_fc
        )

    return kernel


# ----------------------------------------------------------------------------- model
def init_light_lstm_params(key, input_dim, hidden_dim, num_layers):
    """Deterministic init matching PyTorch nn.LSTM / nn.Linear shapes."""
    k = 1.0 / jnp.sqrt(jnp.float32(hidden_dim))
    params = {"layers": []}
    for layer in range(num_layers):
        d_in = input_dim if layer == 0 else hidden_dim
        key, k1, k2, k3, k4 = jax.random.split(key, 5)
        w_ih = jax.random.uniform(k1, (4 * hidden_dim, d_in), jnp.float32, -k, k)
        w_hh = jax.random.uniform(k2, (4 * hidden_dim, hidden_dim), jnp.float32, -k, k)
        b_ih = jax.random.uniform(k3, (4 * hidden_dim,), jnp.float32, -k, k)
        b_hh = jax.random.uniform(k4, (4 * hidden_dim,), jnp.float32, -k, k)
        params["layers"].append(
            {
                "w_ih_t": jnp.transpose(w_ih),                      # (Din, 4H)
                "w_hh_t": jnp.transpose(w_hh),                      # (H,   4H)
                "bias": (b_ih + b_hh).reshape(1, 4 * hidden_dim),   # (1,   4H)
            }
        )
    key, k5, k6 = jax.random.split(key, 3)
    w_fc = jax.random.uniform(k5, (1, hidden_dim), jnp.float32, -k, k)
    b_fc = jax.random.uniform(k6, (1,), jnp.float32, -k, k)
    params["w_fc_t"] = jnp.transpose(w_fc)        # (H, 1)
    params["b_fc"] = b_fc.reshape(1, 1)           # (1, 1)
    return params


@jax.jit
def light_lstm_forward(params, x):
    """x: (B, T, input_dim) float32 -> (B, 1) float32 (batch-first, like PyTorch)."""
    B, T, Din = x.shape
    num_layers = len(params["layers"])
    H = params["layers"][0]["w_hh_t"].shape[0]

    # Pad batch to a multiple of 8 sublanes so every (B, 4H) step-tensor is one
    # unmasked f32 vreg; padded rows are discarded after the kernel.
    B_pad = max(8, ((B + 7) // 8) * 8)
    xt = jnp.transpose(x, (1, 0, 2))                       # (T, B, Din) time-major
    if B_pad != B:
        xt = jnp.pad(xt, ((0, 0), (0, B_pad - B), (0, 0)))
    x2d = xt.reshape(T * B_pad, Din)                       # (T*B_pad, Din)

    packed_w, offsets = _pack_weights(params, H)           # one (R, 4H) weight slab

    kernel = _make_fused_kernel(num_layers, T, B_pad, H, Din, offsets)
    out = pl.pallas_call(
        kernel,
        out_shape=jax.ShapeDtypeStruct((B_pad, 1), jnp.float32),
        in_specs=[_VMEM_SPEC, _VMEM_SPEC],
        out_specs=_VMEM_SPEC,
    )(x2d, packed_w)
    return out[:B]


# ----------------------------------------------------------------------------- main
if __name__ == "__main__":
    INPUT_DIM = 4
    HIDDEN_DIM = 32
    NUM_LAYERS = 2
    BATCH = 2
    SEQ = 8

    root = jax.random.PRNGKey(0)
    pkey, xkey = jax.random.split(root)

    params = init_light_lstm_params(pkey, INPUT_DIM, HIDDEN_DIM, NUM_LAYERS)
    x = jax.random.normal(xkey, (BATCH, SEQ, INPUT_DIM), jnp.float32)

    out = light_lstm_forward(params, x)
    jax.block_until_ready(out)

    assert out.shape == (BATCH, 1), out.shape
    assert out.dtype == jnp.float32, out.dtype
    print("KERNEL_OK")
</pallas_src>

<mosaic_0001>
module attributes {stable_mosaic.version = 11 : i64} {
  func.func @kernel(%arg0: memref<64x4xf32, #tpu.memory_space<vmem>>, %arg1: memref<128x128xf32, #tpu.memory_space<vmem>>, %arg2: memref<8x1xf32, #tpu.memory_space<vmem>>) attributes {dimension_semantics = [], scalar_prefetch = 0 : i64, scratch_operands = 0 : i64, tpu.core_type = #tpu.core_type<tc>} {
    %c0 = arith.constant 0 : index
    %c0_0 = arith.constant 0 : index
    %0 = vector.load %arg1[%c0, %c0_0] : memref<128x128xf32, #tpu.memory_space<vmem>>, vector<4x128xf32>
    %c8 = arith.constant 8 : index
    %c0_1 = arith.constant 0 : index
    %1 = vector.load %arg1[%c8, %c0_1] : memref<128x128xf32, #tpu.memory_space<vmem>>, vector<32x128xf32>
    %c40 = arith.constant 40 : index
    %c0_2 = arith.constant 0 : index
    %2 = vector.load %arg1[%c40, %c0_2] : memref<128x128xf32, #tpu.memory_space<vmem>>, vector<1x128xf32>
    %c0_3 = arith.constant 0 : index
    %c0_4 = arith.constant 0 : index
    %3 = vector.load %arg0[%c0_3, %c0_4] : memref<64x4xf32, #tpu.memory_space<vmem>>, vector<64x4xf32>
    %cst = arith.constant dense<0.000000e+00> : vector<64x128xf32>
    %4 = tpu.matmul %3, %0, %cst {dimension_numbers = #tpu.dot_dimension_numbers<[1], [0], [0], [1], [0, 0, 1, 1], [], []>} : vector<64x4xf32>, vector<4x128xf32>, vector<64x128xf32> -> vector<64x128xf32>
    %5 = vector.broadcast %2 : vector<1x128xf32> to vector<64x128xf32>
    %6 = arith.addf %4, %5 : vector<64x128xf32>
    %c48 = arith.constant 48 : index
    %c0_5 = arith.constant 0 : index
    %7 = vector.load %arg1[%c48, %c0_5] : memref<128x128xf32, #tpu.memory_space<vmem>>, vector<64x128xf32>
    %c112 = arith.constant 112 : index
    %c0_6 = arith.constant 0 : index
    %8 = vector.load %arg1[%c112, %c0_6] : memref<128x128xf32, #tpu.memory_space<vmem>>, vector<1x128xf32>
    %cst_7 = arith.constant 0.000000e+00 : f32
    %9 = vector.broadcast %cst_7 : f32 to vector<8x32xf32>
    %cst_8 = arith.constant 0.000000e+00 : f32
    %10 = vector.broadcast %cst_8 : f32 to vector<8x32xf32>
    %cst_9 = arith.constant 0.000000e+00 : f32
    %11 = vector.broadcast %cst_9 : f32 to vector<8x32xf32>
    %cst_10 = arith.constant 0.000000e+00 : f32
    %12 = vector.broadcast %cst_10 : f32 to vector<8x32xf32>
    %13 = vector.extract_strided_slice %6 {offsets = [0, 0], sizes = [8, 128], strides = [1, 1]} : vector<64x128xf32> to vector<8x128xf32>
    %cst_11 = arith.constant dense<0.000000e+00> : vector<8x128xf32>
    %14 = tpu.matmul %9, %1, %cst_11 {dimension_numbers = #tpu.dot_dimension_numbers<[1], [0], [0], [1], [0, 0, 1, 1], [], []>} : vector<8x32xf32>, vector<32x128xf32>, vector<8x128xf32> -> vector<8x128xf32>
    %15 = arith.addf %13, %14 : vector<8x128xf32>
    %16 = arith.negf %15 : vector<8x128xf32>
    %17 = math.exp %16 : vector<8x128xf32>
    %cst_12 = arith.constant 1.000000e+00 : f32
    %18 = vector.broadcast %cst_12 : f32 to vector<8x128xf32>
    %19 = arith.addf %18, %17 : vector<8x128xf32>
    %20 = arith.divf %18, %19 : vector<8x128xf32>
    %21 = vector.extract_strided_slice %20 {offsets = [0, 0], sizes = [8, 32], strides = [1, 1]} : vector<8x128xf32> to vector<8x32xf32>
    %22 = vector.extract_strided_slice %20 {offsets = [0, 32], sizes = [8, 32], strides = [1, 1]} : vector<8x128xf32> to vector<8x32xf32>
    %23 = vector.extract_strided_slice %20 {offsets = [0, 64], sizes = [8, 32], strides = [1, 1]} : vector<8x128xf32> to vector<8x32xf32>
    %cst_13 = arith.constant 2.000000e+00 : f32
    %24 = vector.broadcast %cst_13 : f32 to vector<8x32xf32>
    %25 = arith.mulf %24, %23 : vector<8x32xf32>
    %cst_14 = arith.constant 1.000000e+00 : f32
    %26 = vector.broadcast %cst_14 : f32 to vector<8x32xf32>
    %27 = arith.subf %25, %26 : vector<8x32xf32>
    %28 = vector.extract_strided_slice %20 {offsets = [0, 96], sizes = [8, 32], strides = [1, 1]} : vector<8x128xf32> to vector<8x32xf32>
    %29 = arith.mulf %22, %11 : vector<8x32xf32>
    %30 = arith.mulf %21, %27 : vector<8x32xf32>
    %31 = arith.addf %29, %30 : vector<8x32xf32>
    %32 = math.tanh %31 : vector<8x32xf32>
    %33 = arith.mulf %28, %32 : vector<8x32xf32>
    %34 = tpu.concatenate %33, %10 in 1 : vector<8x32xf32>, vector<8x32xf32> -> vector<8x64xf32>
    %cst_15 = arith.constant dense<0.000000e+00> : vector<8x128xf32>
    %35 = tpu.matmul %34, %7, %cst_15 {dimension_numbers = #tpu.dot_dimension_numbers<[1], [0], [0], [1], [0, 0, 1, 1], [], []>} : vector<8x64xf32>, vector<64x128xf32>, vector<8x128xf32> -> vector<8x128xf32>
    %36 = vector.broadcast %8 : vector<1x128xf32> to vector<8x128xf32>
    %37 = arith.addf %35, %36 : vector<8x128xf32>
    %38 = arith.negf %37 : vector<8x128xf32>
    %39 = math.exp %38 : vector<8x128xf32>
    %cst_16 = arith.constant 1.000000e+00 : f32
    %40 = vector.broadcast %cst_16 : f32 to vector<8x128xf32>
    %41 = arith.addf %40, %39 : vector<8x128xf32>
    %42 = arith.divf %40, %41 : vector<8x128xf32>
    %43 = vector.extract_strided_slice %42 {offsets = [0, 0], sizes = [8, 32], strides = [1, 1]} : vector<8x128xf32> to vector<8x32xf32>
    %44 = vector.extract_strided_slice %42 {offsets = [0, 32], sizes = [8, 32], strides = [1, 1]} : vector<8x128xf32> to vector<8x32xf32>
    %45 = vector.extract_strided_slice %42 {offsets = [0, 64], sizes = [8, 32], strides = [1, 1]} : vector<8x128xf32> to vector<8x32xf32>
    %cst_17 = arith.constant 2.000000e+00 : f32
    %46 = vector.broadcast %cst_17 : f32 to vector<8x32xf32>
    %47 = arith.mulf %46, %45 : vector<8x32xf32>
    %cst_18 = arith.constant 1.000000e+00 : f32
    %48 = vector.broadcast %cst_18 : f32 to vector<8x32xf32>
    %49 = arith.subf %47, %48 : vector<8x32xf32>
    %50 = vector.extract_strided_slice %42 {offsets = [0, 96], sizes = [8, 32], strides = [1, 1]} : vector<8x128xf32> to vector<8x32xf32>
    %51 = arith.mulf %44, %12 : vector<8x32xf32>
    %52 = arith.mulf %43, %49 : vector<8x32xf32>
    %53 = arith.addf %51, %52 : vector<8x32xf32>
    %54 = math.tanh %53 : vector<8x32xf32>
    %55 = arith.mulf %50, %54 : vector<8x32xf32>
    %56 = vector.extract_strided_slice %6 {offsets = [8, 0], sizes = [8, 128], strides = [1, 1]} : vector<64x128xf32> to vector<8x128xf32>
    %cst_19 = arith.constant dense<0.000000e+00> : vector<8x128xf32>
    %57 = tpu.matmul %33, %1, %cst_19 {dimension_numbers = #tpu.dot_dimension_numbers<[1], [0], [0], [1], [0, 0, 1, 1], [], []>} : vector<8x32xf32>, vector<32x128xf32>, vector<8x128xf32> -> vector<8x128xf32>
    %58 = arith.addf %56, %57 : vector<8x128xf32>
    %59 = arith.negf %58 : vector<8x128xf32>
    %60 = math.exp %59 : vector<8x128xf32>
    %cst_20 = arith.constant 1.000000e+00 : f32
    %61 = vector.broadcast %cst_20 : f32 to vector<8x128xf32>
    %62 = arith.addf %61, %60 : vector<8x128xf32>
    %63 = arith.divf %61, %62 : vector<8x128xf32>
    %64 = vector.extract_strided_slice %63 {offsets = [0, 0], sizes = [8, 32], strides = [1, 1]} : vector<8x128xf32> to vector<8x32xf32>
    %65 = vector.extract_strided_slice %63 {offsets = [0, 32], sizes = [8, 32], strides = [1, 1]} : vector<8x128xf32> to vector<8x32xf32>
    %66 = vector.extract_strided_slice %63 {offsets = [0, 64], sizes = [8, 32], strides = [1, 1]} : vector<8x128xf32> to vector<8x32xf32>
    %cst_21 = arith.constant 2.000000e+00 : f32
    %67 = vector.broadcast %cst_21 : f32 to vector<8x32xf32>
    %68 = arith.mulf %67, %66 : vector<8x32xf32>
    %cst_22 = arith.constant 1.000000e+00 : f32
    %69 = vector.broadcast %cst_22 : f32 to vector<8x32xf32>
    %70 = arith.subf %68, %69 : vector<8x32xf32>
    %71 = vector.extract_strided_slice %63 {offsets = [0, 96], sizes = [8, 32], strides = [1, 1]} : vector<8x128xf32> to vector<8x32xf32>
    %72 = arith.mulf %65, %31 : vector<8x32xf32>
    %73 = arith.mulf %64, %70 : vector<8x32xf32>
    %74 = arith.addf %72, %73 : vector<8x32xf32>
    %75 = math.tanh %74 : vector<8x32xf32>
    %76 = arith.mulf %71, %75 : vector<8x32xf32>
    %77 = tpu.concatenate %76, %55 in 1 : vector<8x32xf32>, vector<8x32xf32> -> vector<8x64xf32>
    %cst_23 = arith.constant dense<0.000000e+00> : vector<8x128xf32>
    %78 = tpu.matmul %77, %7, %cst_23 {dimension_numbers = #tpu.dot_dimension_numbers<[1], [0], [0], [1], [0, 0, 1, 1], [], []>} : vector<8x64xf32>, vector<64x128xf32>, vector<8x128xf32> -> vector<8x128xf32>
    %79 = vector.broadcast %8 : vector<1x128xf32> to vector<8x128xf32>
    %80 = arith.addf %78, %79 : vector<8x128xf32>
    %81 = arith.negf %80 : vector<8x128xf32>
    %82 = math.exp %81 : vector<8x128xf32>
    %cst_24 = arith.constant 1.000000e+00 : f32
    %83 = vector.broadcast %cst_24 : f32 to vector<8x128xf32>
    %84 = arith.addf %83, %82 : vector<8x128xf32>
    %85 = arith.divf %83, %84 : vector<8x128xf32>
    %86 = vector.extract_strided_slice %85 {offsets = [0, 0], sizes = [8, 32], strides = [1, 1]} : vector<8x128xf32> to vector<8x32xf32>
    %87 = vector.extract_strided_slice %85 {offsets = [0, 32], sizes = [8, 32], strides = [1, 1]} : vector<8x128xf32> to vector<8x32xf32>
    %88 = vector.extract_strided_slice %85 {offsets = [0, 64], sizes = [8, 32], strides = [1, 1]} : vector<8x128xf32> to vector<8x32xf32>
    %cst_25 = arith.constant 2.000000e+00 : f32
    %89 = vector.broadcast %cst_25 : f32 to vector<8x32xf32>
    %90 = arith.mulf %89, %88 : vector<8x32xf32>
    %cst_26 = arith.constant 1.000000e+00 : f32
    %91 = vector.broadcast %cst_26 : f32 to vector<8x32xf32>
    %92 = arith.subf %90, %91 : vector<8x32xf32>
    %93 = vector.extract_strided_slice %85 {offsets = [0, 96], sizes = [8, 32], strides = [1, 1]} : vector<8x128xf32> to vector<8x32xf32>
    %94 = arith.mulf %87, %53 : vector<8x32xf32>
    %95 = arith.mulf %86, %92 : vector<8x32xf32>
    %96 = arith.addf %94, %95 : vector<8x32xf32>
    %97 = math.tanh %96 : vector<8x32xf32>
    %98 = arith.mulf %93, %97 : vector<8x32xf32>
    %99 = vector.extract_strided_slice %6 {offsets = [16, 0], sizes = [8, 128], strides = [1, 1]} : vector<64x128xf32> to vector<8x128xf32>
    %cst_27 = arith.constant dense<0.000000e+00> : vector<8x128xf32>
    %100 = tpu.matmul %76, %1, %cst_27 {dimension_numbers = #tpu.dot_dimension_numbers<[1], [0], [0], [1], [0, 0, 1, 1], [], []>} : vector<8x32xf32>, vector<32x128xf32>, vector<8x128xf32> -> vector<8x128xf32>
    %101 = arith.addf %99, %100 : vector<8x128xf32>
    %102 = arith.negf %101 : vector<8x128xf32>
    %103 = math.exp %102 : vector<8x128xf32>
    %cst_28 = arith.constant 1.000000e+00 : f32
    %104 = vector.broadcast %cst_28 : f32 to vector<8x128xf32>
    %105 = arith.addf %104, %103 : vector<8x128xf32>
    %106 = arith.divf %104, %105 : vector<8x128xf32>
    %107 = vector.extract_strided_slice %106 {offsets = [0, 0], sizes = [8, 32], strides = [1, 1]} : vector<8x128xf32> to vector<8x32xf32>
    %108 = vector.extract_strided_slice %106 {offsets = [0, 32], sizes = [8, 32], strides = [1, 1]} : vector<8x128xf32> to vector<8x32xf32>
    %109 = vector.extract_strided_slice %106 {offsets = [0, 64], sizes = [8, 32], strides = [1, 1]} : vector<8x128xf32> to vector<8x32xf32>
    %cst_29 = arith.constant 2.000000e+00 : f32
    %110 = vector.broadcast %cst_29 : f32 to vector<8x32xf32>
    %111 = arith.mulf %110, %109 : vector<8x32xf32>
    %cst_30 = arith.constant 1.000000e+00 : f32
    %112 = vector.broadcast %cst_30 : f32 to vector<8x32xf32>
    %113 = arith.subf %111, %112 : vector<8x32xf32>
    %114 = vector.extract_strided_slice %106 {offsets = [0, 96], sizes = [8, 32], strides = [1, 1]} : vector<8x128xf32> to vector<8x32xf32>
    %115 = arith.mulf %108, %74 : vector<8x32xf32>
    %116 = arith.mulf %107, %113 : vector<8x32xf32>
    %117 = arith.addf %115, %116 : vector<8x32xf32>
    %118 = math.tanh %117 : vector<8x32xf32>
    %119 = arith.mulf %114, %118 : vector<8x32xf32>
    %120 = tpu.concatenate %119, %98 in 1 : vector<8x32xf32>, vector<8x32xf32> -> vector<8x64xf32>
    %cst_31 = arith.constant dense<0.000000e+00> : vector<8x128xf32>
    %121 = tpu.matmul %120, %7, %cst_31 {dimension_numbers = #tpu.dot_dimension_numbers<[1], [0], [0], [1], [0, 0, 1, 1], [], []>} : vector<8x64xf32>, vector<64x128xf32>, vector<8x128xf32> -> vector<8x128xf32>
    %122 = vector.broadcast %8 : vector<1x128xf32> to vector<8x128xf32>
    %123 = arith.addf %121, %122 : vector<8x128xf32>
    %124 = arith.negf %123 : vector<8x128xf32>
    %125 = math.exp %124 : vector<8x128xf32>
    %cst_32 = arith.constant 1.000000e+00 : f32
    %126 = vector.broadcast %cst_32 : f32 to vector<8x128xf32>
    %127 = arith.addf %126, %125 : vector<8x128xf32>
    %128 = arith.divf %126, %127 : vector<8x128xf32>
    %129 = vector.extract_strided_slice %128 {offsets = [0, 0], sizes = [8, 32], strides = [1, 1]} : vector<8x128xf32> to vector<8x32xf32>
    %130 = vector.extract_strided_slice %128 {offsets = [0, 32], sizes = [8, 32], strides = [1, 1]} : vector<8x128xf32> to vector<8x32xf32>
    %131 = vector.extract_strided_slice %128 {offsets = [0, 64], sizes = [8, 32], strides = [1, 1]} : vector<8x128xf32> to vector<8x32xf32>
    %cst_33 = arith.constant 2.000000e+00 : f32
    %132 = vector.broadcast %cst_33 : f32 to vector<8x32xf32>
    %133 = arith.mulf %132, %131 : vector<8x32xf32>
    %cst_34 = arith.constant 1.000000e+00 : f32
    %134 = vector.broadcast %cst_34 : f32 to vector<8x32xf32>
    %135 = arith.subf %133, %134 : vector<8x32xf32>
    %136 = vector.extract_strided_slice %128 {offsets = [0, 96], sizes = [8, 32], strides = [1, 1]} : vector<8x128xf32> to vector<8x32xf32>
    %137 = arith.mulf %130, %96 : vector<8x32xf32>
    %138 = arith.mulf %129, %135 : vector<8x32xf32>
    %139 = arith.addf %137, %138 : vector<8x32xf32>
    %140 = math.tanh %139 : vector<8x32xf32>
    %141 = arith.mulf %136, %140 : vector<8x32xf32>
    %142 = vector.extract_strided_slice %6 {offsets = [24, 0], sizes = [8, 128], strides = [1, 1]} : vector<64x128xf32> to vector<8x128xf32>
    %cst_35 = arith.constant dense<0.000000e+00> : vector<8x128xf32>
    %143 = tpu.matmul %119, %1, %cst_35 {dimension_numbers = #tpu.dot_dimension_numbers<[1], [0], [0], [1], [0, 0, 1, 1], [], []>} : vector<8x32xf32>, vector<32x128xf32>, vector<8x128xf32> -> vector<8x128xf32>
    %144 = arith.addf %142, %143 : vector<8x128xf32>
    %145 = arith.negf %144 : vector<8x128xf32>
    %146 = math.exp %145 : vector<8x128xf32>
    %cst_36 = arith.constant 1.000000e+00 : f32
    %147 = vector.broadcast %cst_36 : f32 to vector<8x128xf32>
    %148 = arith.addf %147, %146 : vector<8x128xf32>
    %149 = arith.divf %147, %148 : vector<8x128xf32>
    %150 = vector.extract_strided_slice %149 {offsets = [0, 0], sizes = [8, 32], strides = [1, 1]} : vector<8x128xf32> to vector<8x32xf32>
    %151 = vector.extract_strided_slice %149 {offsets = [0, 32], sizes = [8, 32], strides = [1, 1]} : vector<8x128xf32> to vector<8x32xf32>
    %152 = vector.extract_strided_slice %149 {offsets = [0, 64], sizes = [8, 32], strides = [1, 1]} : vector<8x128xf32> to vector<8x32xf32>
    %cst_37 = arith.constant 2.000000e+00 : f32
    %153 = vector.broadcast %cst_37 : f32 to vector<8x32xf32>
    %154 = arith.mulf %153, %152 : vector<8x32xf32>
    %cst_38 = arith.constant 1.000000e+00 : f32
    %155 = vector.broadcast %cst_38 : f32 to vector<8x32xf32>
    %156 = arith.subf %154, %155 : vector<8x32xf32>
    %157 = vector.extract_strided_slice %149 {offsets = [0, 96], sizes = [8, 32], strides = [1, 1]} : vector<8x128xf32> to vector<8x32xf32>
    %158 = arith.mulf %151, %117 : vector<8x32xf32>
    %159 = arith.mulf %150, %156 : vector<8x32xf32>
    %160 = arith.addf %158, %159 : vector<8x32xf32>
    %161 = math.tanh %160 : vector<8x32xf32>
    %162 = arith.mulf %157, %161 : vector<8x32xf32>
    %163 = tpu.concatenate %162, %141 in 1 : vector<8x32xf32>, vector<8x32xf32> -> vector<8x64xf32>
    %cst_39 = arith.constant dense<0.000000e+00> : vector<8x128xf32>
    %164 = tpu.matmul %163, %7, %cst_39 {dimension_numbers = #tpu.dot_dimension_numbers<[1], [0], [0], [1], [0, 0, 1, 1], [], []>} : vector<8x64xf32>, vector<64x128xf32>, vector<8x128xf32> -> vector<8x128xf32>
    %165 = vector.broadcast %8 : vector<1x128xf32> to vector<8x128xf32>
    %166 = arith.addf %164, %165 : vector<8x128xf32>
    %167 = arith.negf %166 : vector<8x128xf32>
    %168 = math.exp %167 : vector<8x128xf32>
    %cst_40 = arith.constant 1.000000e+00 : f32
    %169 = vector.broadcast %cst_40 : f32 to vector<8x128xf32>
    %170 = arith.addf %169, %168 : vector<8x128xf32>
    %171 = arith.divf %169, %170 : vector<8x128xf32>
    %172 = vector.extract_strided_slice %171 {offsets = [0, 0], sizes = [8, 32], strides = [1, 1]} : vector<8x128xf32> to vector<8x32xf32>
    %173 = vector.extract_strided_slice %171 {offsets = [0, 32], sizes = [8, 32], strides = [1, 1]} : vector<8x128xf32> to vector<8x32xf32>
    %174 = vector.extract_strided_slice %171 {offsets = [0, 64], sizes = [8, 32], strides = [1, 1]} : vector<8x128xf32> to vector<8x32xf32>
    %cst_41 = arith.constant 2.000000e+00 : f32
    %175 = vector.broadcast %cst_41 : f32 to vector<8x32xf32>
    %176 = arith.mulf %175, %174 : vector<8x32xf32>
    %cst_42 = arith.constant 1.000000e+00 : f32
    %177 = vector.broadcast %cst_42 : f32 to vector<8x32xf32>
    %178 = arith.subf %176, %177 : vector<8x32xf32>
    %179 = vector.extract_strided_slice %171 {offsets = [0, 96], sizes = [8, 32], strides = [1, 1]} : vector<8x128xf32> to vector<8x32xf32>
    %180 = arith.mulf %173, %139 : vector<8x32xf32>
    %181 = arith.mulf %172, %178 : vector<8x32xf32>
    %182 = arith.addf %180, %181 : vector<8x32xf32>
    %183 = math.tanh %182 : vector<8x32xf32>
    %184 = arith.mulf %179, %183 : vector<8x32xf32>
    %185 = vector.extract_strided_slice %6 {offsets = [32, 0], sizes = [8, 128], strides = [1, 1]} : vector<64x128xf32> to vector<8x128xf32>
    %cst_43 = arith.constant dense<0.000000e+00> : vector<8x128xf32>
    %186 = tpu.matmul %162, %1, %cst_43 {dimension_numbers = #tpu.dot_dimension_numbers<[1], [0], [0], [1], [0, 0, 1, 1], [], []>} : vector<8x32xf32>, vector<32x128xf32>, vector<8x128xf32> -> vector<8x128xf32>
    %187 = arith.addf %185, %186 : vector<8x128xf32>
    %188 = arith.negf %187 : vector<8x128xf32>
    %189 = math.exp %188 : vector<8x128xf32>
    %cst_44 = arith.constant 1.000000e+00 : f32
    %190 = vector.broadcast %cst_44 : f32 to vector<8x128xf32>
    %191 = arith.addf %190, %189 : vector<8x128xf32>
    %192 = arith.divf %190, %191 : vector<8x128xf32>
    %193 = vector.extract_strided_slice %192 {offsets = [0, 0], sizes = [8, 32], strides = [1, 1]} : vector<8x128xf32> to vector<8x32xf32>
    %194 = vector.extract_strided_slice %192 {offsets = [0, 32], sizes = [8, 32], strides = [1, 1]} : vector<8x128xf32> to vector<8x32xf32>
    %195 = vector.extract_strided_slice %192 {offsets = [0, 64], sizes = [8, 32], strides = [1, 1]} : vector<8x128xf32> to vector<8x32xf32>
    %cst_45 = arith.constant 2.000000e+00 : f32
    %196 = vector.broadcast %cst_45 : f32 to vector<8x32xf32>
    %197 = arith.mulf %196, %195 : vector<8x32xf32>
    %cst_46 = arith.constant 1.000000e+00 : f32
    %198 = vector.broadcast %cst_46 : f32 to vector<8x32xf32>
    %199 = arith.subf %197, %198 : vector<8x32xf32>
    %200 = vector.extract_strided_slice %192 {offsets = [0, 96], sizes = [8, 32], strides = [1, 1]} : vector<8x128xf32> to vector<8x32xf32>
    %201 = arith.mulf %194, %160 : vector<8x32xf32>
    %202 = arith.mulf %193, %199 : vector<8x32xf32>
    %203 = arith.addf %201, %202 : vector<8x32xf32>
    %204 = math.tanh %203 : vector<8x32xf32>
    %205 = arith.mulf %200, %204 : vector<8x32xf32>
    %206 = tpu.concatenate %205, %184 in 1 : vector<8x32xf32>, vector<8x32xf32> -> vector<8x64xf32>
    %cst_47 = arith.constant dense<0.000000e+00> : vector<8x128xf32>
    %207 = tpu.matmul %206, %7, %cst_47 {dimension_numbers = #tpu.dot_dimension_numbers<[1], [0], [0], [1], [0, 0, 1, 1], [], []>} : vector<8x64xf32>, vector<64x128xf32>, vector<8x128xf32> -> vector<8x128xf32>
    %208 = vector.broadcast %8 : vector<1x128xf32> to vector<8x128xf32>
    %209 = arith.addf %207, %208 : vector<8x128xf32>
    %210 = arith.negf %209 : vector<8x128xf32>
    %211 = math.exp %210 : vector<8x128xf32>
    %cst_48 = arith.constant 1.000000e+00 : f32
    %212 = vector.broadcast %cst_48 : f32 to vector<8x128xf32>
    %213 = arith.addf %212, %211 : vector<8x128xf32>
    %214 = arith.divf %212, %213 : vector<8x128xf32>
    %215 = vector.extract_strided_slice %214 {offsets = [0, 0], sizes = [8, 32], strides = [1, 1]} : vector<8x128xf32> to vector<8x32xf32>
    %216 = vector.extract_strided_slice %214 {offsets = [0, 32], sizes = [8, 32], strides = [1, 1]} : vector<8x128xf32> to vector<8x32xf32>
    %217 = vector.extract_strided_slice %214 {offsets = [0, 64], sizes = [8, 32], strides = [1, 1]} : vector<8x128xf32> to vector<8x32xf32>
    %cst_49 = arith.constant 2.000000e+00 : f32
    %218 = vector.broadcast %cst_49 : f32 to vector<8x32xf32>
    %219 = arith.mulf %218, %217 : vector<8x32xf32>
    %cst_50 = arith.constant 1.000000e+00 : f32
    %220 = vector.broadcast %cst_50 : f32 to vector<8x32xf32>
    %221 = arith.subf %219, %220 : vector<8x32xf32>
    %222 = vector.extract_strided_slice %214 {offsets = [0, 96], sizes = [8, 32], strides = [1, 1]} : vector<8x128xf32> to vector<8x32xf32>
    %223 = arith.mulf %216, %182 : vector<8x32xf32>
    %224 = arith.mulf %215, %221 : vector<8x32xf32>
    %225 = arith.addf %223, %224 : vector<8x32xf32>
    %226 = math.tanh %225 : vector<8x32xf32>
    %227 = arith.mulf %222, %226 : vector<8x32xf32>
    %228 = vector.extract_strided_slice %6 {offsets = [40, 0], sizes = [8, 128], strides = [1, 1]} : vector<64x128xf32> to vector<8x128xf32>
    %cst_51 = arith.constant dense<0.000000e+00> : vector<8x128xf32>
    %229 = tpu.matmul %205, %1, %cst_51 {dimension_numbers = #tpu.dot_dimension_numbers<[1], [0], [0], [1], [0, 0, 1, 1], [], []>} : vector<8x32xf32>, vector<32x128xf32>, vector<8x128xf32> -> vector<8x128xf32>
    %230 = arith.addf %228, %229 : vector<8x128xf32>
    %231 = arith.negf %230 : vector<8x128xf32>
    %232 = math.exp %231 : vector<8x128xf32>
    %cst_52 = arith.constant 1.000000e+00 : f32
    %233 = vector.broadcast %cst_52 : f32 to vector<8x128xf32>
    %234 = arith.addf %233, %232 : vector<8x128xf32>
    %235 = arith.divf %233, %234 : vector<8x128xf32>
    %236 = vector.extract_strided_slice %235 {offsets = [0, 0], sizes = [8, 32], strides = [1, 1]} : vector<8x128xf32> to vector<8x32xf32>
    %237 = vector.extract_strided_slice %235 {offsets = [0, 32], sizes = [8, 32], strides = [1, 1]} : vector<8x128xf32> to vector<8x32xf32>
    %238 = vector.extract_strided_slice %235 {offsets = [0, 64], sizes = [8, 32], strides = [1, 1]} : vector<8x128xf32> to vector<8x32xf32>
    %cst_53 = arith.constant 2.000000e+00 : f32
    %239 = vector.broadcast %cst_53 : f32 to vector<8x32xf32>
    %240 = arith.mulf %239, %238 : vector<8x32xf32>
    %cst_54 = arith.constant 1.000000e+00 : f32
    %241 = vector.broadcast %cst_54 : f32 to vector<8x32xf32>
    %242 = arith.subf %240, %241 : vector<8x32xf32>
    %243 = vector.extract_strided_slice %235 {offsets = [0, 96], sizes = [8, 32], strides = [1, 1]} : vector<8x128xf32> to vector<8x32xf32>
    %244 = arith.mulf %237, %203 : vector<8x32xf32>
    %245 = arith.mulf %236, %242 : vector<8x32xf32>
    %246 = arith.addf %244, %245 : vector<8x32xf32>
    %247 = math.tanh %246 : vector<8x32xf32>
    %248 = arith.mulf %243, %247 : vector<8x32xf32>
    %249 = tpu.concatenate %248, %227 in 1 : vector<8x32xf32>, vector<8x32xf32> -> vector<8x64xf32>
    %cst_55 = arith.constant dense<0.000000e+00> : vector<8x128xf32>
    %250 = tpu.matmul %249, %7, %cst_55 {dimension_numbers = #tpu.dot_dimension_numbers<[1], [0], [0], [1], [0, 0, 1, 1], [], []>} : vector<8x64xf32>, vector<64x128xf32>, vector<8x128xf32> -> vector<8x128xf32>
    %251 = vector.broadcast %8 : vector<1x128xf32> to vector<8x128xf32>
    %252 = arith.addf %250, %251 : vector<8x128xf32>
    %253 = arith.negf %252 : vector<8x128xf32>
    %254 = math.exp %253 : vector<8x128xf32>
    %cst_56 = arith.constant 1.000000e+00 : f32
    %255 = vector.broadcast %cst_56 : f32 to vector<8x128xf32>
    %256 = arith.addf %255, %254 : vector<8x128xf32>
    %257 = arith.divf %255, %256 : vector<8x128xf32>
    %258 = vector.extract_strided_slice %257 {offsets = [0, 0], sizes = [8, 32], strides = [1, 1]} : vector<8x128xf32> to vector<8x32xf32>
    %259 = vector.extract_strided_slice %257 {offsets = [0, 32], sizes = [8, 32], strides = [1, 1]} : vector<8x128xf32> to vector<8x32xf32>
    %260 = vector.extract_strided_slice %257 {offsets = [0, 64], sizes = [8, 32], strides = [1, 1]} : vector<8x128xf32> to vector<8x32xf32>
    %cst_57 = arith.constant 2.000000e+00 : f32
    %261 = vector.broadcast %cst_57 : f32 to vector<8x32xf32>
    %262 = arith.mulf %261, %260 : vector<8x32xf32>
    %cst_58 = arith.constant 1.000000e+00 : f32
    %263 = vector.broadcast %cst_58 : f32 to vector<8x32xf32>
    %264 = arith.subf %262, %263 : vector<8x32xf32>
    %265 = vector.extract_strided_slice %257 {offsets = [0, 96], sizes = [8, 32], strides = [1, 1]} : vector<8x128xf32> to vector<8x32xf32>
    %266 = arith.mulf %259, %225 : vector<8x32xf32>
    %267 = arith.mulf %258, %264 : vector<8x32xf32>
    %268 = arith.addf %266, %267 : vector<8x32xf32>
    %269 = math.tanh %268 : vector<8x32xf32>
    %270 = arith.mulf %265, %269 : vector<8x32xf32>
    %271 = vector.extract_strided_slice %6 {offsets = [48, 0], sizes = [8, 128], strides = [1, 1]} : vector<64x128xf32> to vector<8x128xf32>
    %cst_59 = arith.constant dense<0.000000e+00> : vector<8x128xf32>
    %272 = tpu.matmul %248, %1, %cst_59 {dimension_numbers = #tpu.dot_dimension_numbers<[1], [0], [0], [1], [0, 0, 1, 1], [], []>} : vector<8x32xf32>, vector<32x128xf32>, vector<8x128xf32> -> vector<8x128xf32>
    %273 = arith.addf %271, %272 : vector<8x128xf32>
    %274 = arith.negf %273 : vector<8x128xf32>
    %275 = math.exp %274 : vector<8x128xf32>
    %cst_60 = arith.constant 1.000000e+00 : f32
    %276 = vector.broadcast %cst_60 : f32 to vector<8x128xf32>
    %277 = arith.addf %276, %275 : vector<8x128xf32>
    %278 = arith.divf %276, %277 : vector<8x128xf32>
    %279 = vector.extract_strided_slice %278 {offsets = [0, 0], sizes = [8, 32], strides = [1, 1]} : vector<8x128xf32> to vector<8x32xf32>
    %280 = vector.extract_strided_slice %278 {offsets = [0, 32], sizes = [8, 32], strides = [1, 1]} : vector<8x128xf32> to vector<8x32xf32>
    %281 = vector.extract_strided_slice %278 {offsets = [0, 64], sizes = [8, 32], strides = [1, 1]} : vector<8x128xf32> to vector<8x32xf32>
    %cst_61 = arith.constant 2.000000e+00 : f32
    %282 = vector.broadcast %cst_61 : f32 to vector<8x32xf32>
    %283 = arith.mulf %282, %281 : vector<8x32xf32>
    %cst_62 = arith.constant 1.000000e+00 : f32
    %284 = vector.broadcast %cst_62 : f32 to vector<8x32xf32>
    %285 = arith.subf %283, %284 : vector<8x32xf32>
    %286 = vector.extract_strided_slice %278 {offsets = [0, 96], sizes = [8, 32], strides = [1, 1]} : vector<8x128xf32> to vector<8x32xf32>
    %287 = arith.mulf %280, %246 : vector<8x32xf32>
    %288 = arith.mulf %279, %285 : vector<8x32xf32>
    %289 = arith.addf %287, %288 : vector<8x32xf32>
    %290 = math.tanh %289 : vector<8x32xf32>
    %291 = arith.mulf %286, %290 : vector<8x32xf32>
    %292 = tpu.concatenate %291, %270 in 1 : vector<8x32xf32>, vector<8x32xf32> -> vector<8x64xf32>
    %cst_63 = arith.constant dense<0.000000e+00> : vector<8x128xf32>
    %293 = tpu.matmul %292, %7, %cst_63 {dimension_numbers = #tpu.dot_dimension_numbers<[1], [0], [0], [1], [0, 0, 1, 1], [], []>} : vector<8x64xf32>, vector<64x128xf32>, vector<8x128xf32> -> vector<8x128xf32>
    %294 = vector.broadcast %8 : vector<1x128xf32> to vector<8x128xf32>
    %295 = arith.addf %293, %294 : vector<8x128xf32>
    %296 = arith.negf %295 : vector<8x128xf32>
    %297 = math.exp %296 : vector<8x128xf32>
    %cst_64 = arith.constant 1.000000e+00 : f32
    %298 = vector.broadcast %cst_64 : f32 to vector<8x128xf32>
    %299 = arith.addf %298, %297 : vector<8x128xf32>
    %300 = arith.divf %298, %299 : vector<8x128xf32>
    %301 = vector.extract_strided_slice %300 {offsets = [0, 0], sizes = [8, 32], strides = [1, 1]} : vector<8x128xf32> to vector<8x32xf32>
    %302 = vector.extract_strided_slice %300 {offsets = [0, 32], sizes = [8, 32], strides = [1, 1]} : vector<8x128xf32> to vector<8x32xf32>
    %303 = vector.extract_strided_slice %300 {offsets = [0, 64], sizes = [8, 32], strides = [1, 1]} : vector<8x128xf32> to vector<8x32xf32>
    %cst_65 = arith.constant 2.000000e+00 : f32
    %304 = vector.broadcast %cst_65 : f32 to vector<8x32xf32>
    %305 = arith.mulf %304, %303 : vector<8x32xf32>
    %cst_66 = arith.constant 1.000000e+00 : f32
    %306 = vector.broadcast %cst_66 : f32 to vector<8x32xf32>
    %307 = arith.subf %305, %306 : vector<8x32xf32>
    %308 = vector.extract_strided_slice %300 {offsets = [0, 96], sizes = [8, 32], strides = [1, 1]} : vector<8x128xf32> to vector<8x32xf32>
    %309 = arith.mulf %302, %268 : vector<8x32xf32>
    %310 = arith.mulf %301, %307 : vector<8x32xf32>
    %311 = arith.addf %309, %310 : vector<8x32xf32>
    %312 = math.tanh %311 : vector<8x32xf32>
    %313 = arith.mulf %308, %312 : vector<8x32xf32>
    %314 = vector.extract_strided_slice %6 {offsets = [56, 0], sizes = [8, 128], strides = [1, 1]} : vector<64x128xf32> to vector<8x128xf32>
    %cst_67 = arith.constant dense<0.000000e+00> : vector<8x128xf32>
    %315 = tpu.matmul %291, %1, %cst_67 {dimension_numbers = #tpu.dot_dimension_numbers<[1], [0], [0], [1], [0, 0, 1, 1], [], []>} : vector<8x32xf32>, vector<32x128xf32>, vector<8x128xf32> -> vector<8x128xf32>
    %316 = arith.addf %314, %315 : vector<8x128xf32>
    %317 = arith.negf %316 : vector<8x128xf32>
    %318 = math.exp %317 : vector<8x128xf32>
    %cst_68 = arith.constant 1.000000e+00 : f32
    %319 = vector.broadcast %cst_68 : f32 to vector<8x128xf32>
    %320 = arith.addf %319, %318 : vector<8x128xf32>
    %321 = arith.divf %319, %320 : vector<8x128xf32>
    %322 = vector.extract_strided_slice %321 {offsets = [0, 0], sizes = [8, 32], strides = [1, 1]} : vector<8x128xf32> to vector<8x32xf32>
    %323 = vector.extract_strided_slice %321 {offsets = [0, 32], sizes = [8, 32], strides = [1, 1]} : vector<8x128xf32> to vector<8x32xf32>
    %324 = vector.extract_strided_slice %321 {offsets = [0, 64], sizes = [8, 32], strides = [1, 1]} : vector<8x128xf32> to vector<8x32xf32>
    %cst_69 = arith.constant 2.000000e+00 : f32
    %325 = vector.broadcast %cst_69 : f32 to vector<8x32xf32>
    %326 = arith.mulf %325, %324 : vector<8x32xf32>
    %cst_70 = arith.constant 1.000000e+00 : f32
    %327 = vector.broadcast %cst_70 : f32 to vector<8x32xf32>
    %328 = arith.subf %326, %327 : vector<8x32xf32>
    %329 = vector.extract_strided_slice %321 {offsets = [0, 96], sizes = [8, 32], strides = [1, 1]} : vector<8x128xf32> to vector<8x32xf32>
    %330 = arith.mulf %323, %289 : vector<8x32xf32>
    %331 = arith.mulf %322, %328 : vector<8x32xf32>
    %332 = arith.addf %330, %331 : vector<8x32xf32>
    %333 = math.tanh %332 : vector<8x32xf32>
    %334 = arith.mulf %329, %333 : vector<8x32xf32>
    %335 = tpu.concatenate %334, %313 in 1 : vector<8x32xf32>, vector<8x32xf32> -> vector<8x64xf32>
    %cst_71 = arith.constant dense<0.000000e+00> : vector<8x128xf32>
    %336 = tpu.matmul %335, %7, %cst_71 {dimension_numbers = #tpu.dot_dimension_numbers<[1], [0], [0], [1], [0, 0, 1, 1], [], []>} : vector<8x64xf32>, vector<64x128xf32>, vector<8x128xf32> -> vector<8x128xf32>
    %337 = vector.broadcast %8 : vector<1x128xf32> to vector<8x128xf32>
    %338 = arith.addf %336, %337 : vector<8x128xf32>
    %339 = arith.negf %338 : vector<8x128xf32>
    %340 = math.exp %339 : vector<8x128xf32>
    %cst_72 = arith.constant 1.000000e+00 : f32
    %341 = vector.broadcast %cst_72 : f32 to vector<8x128xf32>
    %342 = arith.addf %341, %340 : vector<8x128xf32>
    %343 = arith.divf %341, %342 : vector<8x128xf32>
    %344 = vector.extract_strided_slice %343 {offsets = [0, 0], sizes = [8, 32], strides = [1, 1]} : vector<8x128xf32> to vector<8x32xf32>
    %345 = vector.extract_strided_slice %343 {offsets = [0, 32], sizes = [8, 32], strides = [1, 1]} : vector<8x128xf32> to vector<8x32xf32>
    %346 = vector.extract_strided_slice %343 {offsets = [0, 64], sizes = [8, 32], strides = [1, 1]} : vector<8x128xf32> to vector<8x32xf32>
    %cst_73 = arith.constant 2.000000e+00 : f32
    %347 = vector.broadcast %cst_73 : f32 to vector<8x32xf32>
    %348 = arith.mulf %347, %346 : vector<8x32xf32>
    %cst_74 = arith.constant 1.000000e+00 : f32
    %349 = vector.broadcast %cst_74 : f32 to vector<8x32xf32>
    %350 = arith.subf %348, %349 : vector<8x32xf32>
    %351 = vector.extract_strided_slice %343 {offsets = [0, 96], sizes = [8, 32], strides = [1, 1]} : vector<8x128xf32> to vector<8x32xf32>
    %352 = arith.mulf %345, %311 : vector<8x32xf32>
    %353 = arith.mulf %344, %350 : vector<8x32xf32>
    %354 = arith.addf %352, %353 : vector<8x32xf32>
    %355 = math.tanh %354 : vector<8x32xf32>
    %356 = arith.mulf %351, %355 : vector<8x32xf32>
    %c120 = arith.constant 120 : index
    %c0_75 = arith.constant 0 : index
    %357 = vector.load %arg1[%c120, %c0_75] : memref<128x128xf32, #tpu.memory_space<vmem>>, vector<1x128xf32>
    %358 = vector.extract_strided_slice %357 {offsets = [0, 0], sizes = [1, 32], strides = [1, 1]} : vector<1x128xf32> to vector<1x32xf32>
    %359 = vector.extract_strided_slice %357 {offsets = [0, 32], sizes = [1, 1], strides = [1, 1]} : vector<1x128xf32> to vector<1x1xf32>
    %360 = vector.broadcast %358 : vector<1x32xf32> to vector<8x32xf32>
    %361 = arith.mulf %356, %360 : vector<8x32xf32>
    %cst_76 = arith.constant dense<0.000000e+00> : vector<8xf32>
    %362 = vector.multi_reduction <add>, %361, %cst_76 [1] : vector<8x32xf32> to vector<8xf32>
    %363 = vector.shape_cast %362 : vector<8xf32> to vector<8x1xf32>
    %364 = vector.broadcast %359 : vector<1x1xf32> to vector<8x1xf32>
    %365 = arith.addf %363, %364 : vector<8x1xf32>
    %c0_77 = arith.constant 0 : index
    %c0_78 = arith.constant 0 : index
    %366 = vector.load %arg2[%c0_77, %c0_78] : memref<8x1xf32, #tpu.memory_space<vmem>>, vector<8x1xf32>
    tpu.vector_store %arg2[%c0_77, %c0_78], %365 {strides = array<i32>} : memref<8x1xf32, #tpu.memory_space<vmem>>, vector<8x1xf32>,
    return
  }
}

</mosaic_0001>

<bundles_post_ra>
// kernel: light_lstm_forward.1
= control target key start
LH: loop header
LB: loop body
LE: loop exit
PB: predicated region body
PF: predicated region fallthrough
CT: control target
= control target key end

     0   :  { %vm51_vm0 = vcmask 1043456   ;;  %vm26_vm1 = vcmask 31744   ;;  %v1339_v6 = vmov 0.0   ;;  %s1340_s23 = smov 64   ;;  %s1341_s24 = smov 32   ;;  %vm105_vm6 = vcmask 261120   ;;  %s1731_s1 = inlined_call_operand.vmem [shape: f32[128,128], index: 1, kind: input, shape index: {}]   ;;  %s1732_s0 = inlined_call_operand.vmem [shape: f32[64,4], index: 0, kind: input, shape index: {}]   ;;  %s1733_s2 = inlined_call_operand.vmem [shape: f32[8,1], index: 2, kind: output, shape index: {}]  }
   0x1   :  { %v1361_v0 = vld [vmem:[%s1731_s1 + $0x20] sm:$0xff]  ;;  %v1366_v1 = vld [vmem:[%s1731_s1 + $0x18] sm:$0xff]  ;;  %v1378_v4 = vld [vmem:[%s1731_s1 + $0x10] sm:$0xff]  ;;  %vm174_vm7 = vcmask 523264   ;;  %s1342_s8 = smov 96  }
   0x2   :  { %v11_v2 = vld [vmem:[%s1731_s1] sm:$0xf]  ;;  %121 = vmatpush.msra.mxu1 %v1361_v0  ;;  %250 = vmatpush.msra.mxu3 %v1361_v0  ;;  %v1386_v5 = vld [vmem:[%s1731_s1 + $0x8] sm:$0xff]  ;;  %v1424_v35 = vld [vmem:[%s1731_s1 + $0x58] sm:$0xff] }
   0x3   :  { %1178 = vmatpush.msk.msra.mxu0 %vm51_vm0, %v11_v2  ;;  %v17_v3 = vld [vmem:[%s1732_s0] sm:$0xff]  ;;  %v1400_v7 = vld [vmem:[%s1731_s1 + $0x28] ss:$0 sm:$0xff]  ;;  %v1432_v36 = vld [vmem:[%s1731_s1 + $0x50] sm:$0xff] }
   0x4   :  { %1179 = vmatmul.msk.f32.vlgmr.msra.gmra.mxu0 %vm26_vm1, %v17_v3  ;;  %122 = vmatpush.msra.mxu1 %v1366_v1  ;;  %v1412_v33 = vld [vmem:[%s1731_s1 + $0x68] sm:$0xff]  ;;  %v1417_v34 = vld [vmem:[%s1731_s1 + $0x60] sm:$0xff]  ;;  %v1456_v39 = vld [vmem:[%s1731_s1 + $0x38] sm:$0xff] }
   0x5   :  { %251 = vmatpush.msra.mxu3 %v1366_v1  ;;  %186 = vmatpush.msra.mxu2 %v1412_v33  ;;  %v1440_v37 = vld [vmem:[%s1731_s1 + $0x48] sm:$0xff]  ;;  %v1448_v38 = vld [vmem:[%s1731_s1 + $0x40] sm:$0xff]  ;;  %v1469_v42 = vld [vmem:[%s1731_s1 + $0x30] sm:$0xff] }
   0x6   :  { %123 = vmatpush.msra.mxu1 %v1378_v4  ;;  %1103 = vmatpush.msrb.mxu0 %v1412_v33  ;;  %v18_v43 = vld [vmem:[%s1732_s0 + $0x8] sm:$0xff]  ;;  %v1513_v48 = vld [vmem:[%s1731_s1 + $0x70] ss:$0 sm:$0xff] }
   0x7   :  { %252 = vmatpush.msra.mxu3 %v1378_v4  ;;  %187 = vmatpush.msra.mxu2 %v1417_v34 }
   0x8   :  { %124 = vmatpush.msra.mxu1 %v1386_v5  ;;  %1104 = vmatpush.msrb.mxu0 %v1417_v34 }
   0x9   :  { %125 = vmatmul.f32.vlgmr.msra.gmra.mxu1 %v1339_v6  ;;  %253 = vmatpush.msra.mxu3 %v1386_v5 }
   0xa   :  { %317 = vmatpush.msrb.mxu1 %v1412_v33  ;;  %188 = vmatpush.msra.mxu2 %v1424_v35 }
   0xb   :  { %381 = vmatpush.msrb.mxu3 %v1361_v0  ;;  %1105 = vmatpush.msrb.mxu0 %v1424_v35 }
   0xc   :  { %318 = vmatpush.msrb.mxu1 %v1417_v34  ;;  %189 = vmatpush.msra.mxu2 %v1432_v36 }
   0xd   :  { %382 = vmatpush.msrb.mxu3 %v1366_v1  ;;  %1106 = vmatpush.msrb.mxu0 %v1432_v36 }
   0xe   :  { %319 = vmatpush.msrb.mxu1 %v1424_v35  ;;  %190 = vmatpush.msra.mxu2 %v1440_v37 }
   0xf   :  { %383 = vmatpush.msrb.mxu3 %v1378_v4  ;;  %1107 = vmatpush.msrb.mxu0 %v1440_v37 }
  0x10   :  { %320 = vmatpush.msrb.mxu1 %v1432_v36  ;;  %191 = vmatpush.msra.mxu2 %v1448_v38 }
  0x11   :  { %384 = vmatpush.msrb.mxu3 %v1386_v5  ;;  %1108 = vmatpush.msrb.mxu0 %v1448_v38 }
  0x12   :  { %321 = vmatpush.msrb.mxu1 %v1440_v37  ;;  %192 = vmatpush.msra.mxu2 %v1456_v39 }
  0x13   :  { %1109 = vmatpush.msrb.mxu0 %v1456_v39 }
  0x14   :  { %322 = vmatpush.msrb.mxu1 %v1448_v38  ;;  %193 = vmatpush.msra.mxu2 %v1469_v42 }
  0x15   :  { %1180 = vmatmul.msk.f32.gmra.mxu0 %vm26_vm1, %v18_v43 }
  0x16   :  { %323 = vmatpush.msrb.mxu1 %v1456_v39  ;;  %448 = vmatpush.msrb.mxu2 %v1412_v33 }
  0x17   :  { %1110 = vmatpush.msrb.mxu0 %v1469_v42 }
  0x18   :  { %324 = vmatpush.msrb.mxu1 %v1469_v42  ;;  %449 = vmatpush.msrb.mxu2 %v1417_v34 }
  0x1a   :  { %579 = vmatpush.msra.mxu1 %v1412_v33  ;;  %450 = vmatpush.msrb.mxu2 %v1424_v35 }
  0x1c   :  { %580 = vmatpush.msra.mxu1 %v1417_v34  ;;  %451 = vmatpush.msrb.mxu2 %v1432_v36 }
  0x1e   :  { %581 = vmatpush.msra.mxu1 %v1424_v35  ;;  %452 = vmatpush.msrb.mxu2 %v1440_v37 }
  0x20   :  { %582 = vmatpush.msra.mxu1 %v1432_v36  ;;  %453 = vmatpush.msrb.mxu2 %v1448_v38 }
  0x22   :  { %583 = vmatpush.msra.mxu1 %v1440_v37  ;;  %454 = vmatpush.msrb.mxu2 %v1456_v39 }
  0x24   :  { %584 = vmatpush.msra.mxu1 %v1448_v38  ;;  %455 = vmatpush.msrb.mxu2 %v1469_v42 }
  0x26   :  { %585 = vmatpush.msra.mxu1 %v1456_v39 }
  0x28   :  { %586 = vmatpush.msra.mxu1 %v1469_v42 }
  0x81   :  { %v72_v8 = vpop.f32.mrf.mxu0 }
  0x82   :  { %v73_v9 = vadd.f32 %v1400_v7, %v72_v8 }
  0x86   :  { %v126_v10 = vpop.f32.mrf.mxu1 }
  0x87   :  { %v129_v11 = vadd.f32 %v126_v10, %v73_v9 }
  0x89   :  { %v1187_v12 = vmul.f32 -1.442695, %v129_v11 }
  0x8b   :  { %1241 = vpow2.f32 %v1187_v12 }
  0x91   :  { %v1242_v13 = vpop.eup %1241 }
  0x92   :  { %v133_v14 = vadd.f32 1.0, %v1242_v13  ;;  %v75_v46 = vpop.f32.mrf.mxu0 }
  0x93   :  { %v76_v47 = vadd.f32 %v1400_v7, %v75_v46 }
  0x94   :  { %1243 = vrcp.f32 %v133_v14  ;;  %v145_v18 = vand.u32 2147483648, %v133_v14  ;;  %v143_v20 = vand.u32 2147483647, %v133_v14  ;;  %vm139_vm3 = vweird.f32 %v133_v14 }
  0x96   :  { %v146_v22 = vor.u32 1.1754944e-38, %v145_v18  ;;  %vm144_vm5 = vcmp.eq.f32.partialorder %v143_v20, 8.507059e+37 }
  0x9a   :  { %v1244_v15 = vpop.eup %1243 }
  0x9b   :  { %v135_v16 = vmul.f32 %v1244_v15, %v133_v14  ;;  %vm140_vm2 = vweird.f32 %v1244_v15 }
  0x9c   :  { %vm141_vm4 = vmor %vm139_vm3, %vm140_vm2 }
  0x9d   :  { %v136_v17 = vsub.f32 1.0, %v135_v16 }
  0x9f   :  { %v137_v19 = vmul.f32 %v1244_v15, %v136_v17 }
  0xa1   :  { %v138_v21 = vadd.f32 %v1244_v15, %v137_v19 }
  0xa3   :  { %v142_v23 = vsel %vm141_vm4, %v1244_v15, %v138_v21 }
  0xa4   :  { %v147_v24 = vsel %vm144_vm5, %v146_v22, %v142_v23 }
  0xa5   :  { %v149_v25 = vmul.f32 2.0, %v147_v24  ;;  %v151_v29 = vmul.f32 0.0, %v147_v24 }
  0xa7   :  { %v1188_v26 = vadd.f32 -1.0, %v149_v25 }
  0xa9   :  { %153 = vrot.lane.b32.xlu0 %v1188_v26, %s1340_s23 }
 0x11b   :  { %v154_v27 = vpop.permute.xlu0 %153 }
 0x11c   :  { %v156_v28 = vmul.f32 %v154_v27, %v147_v24 }
 0x11e   :  { %158 = vrot.lane.b32.xlu0 %v156_v28, %s1341_s24 }
 0x190   :  { %v159_v30 = vpop.permute.xlu0 %158 }
 0x191   :  { %v1405_v31 = vadd.f32 %v159_v30, %v151_v29 }
 0x193   :  { %1245 = vtanh.f32 %v1405_v31 }
 0x199   :  { %v1246_v32 = vpop.eup %1245 }
 0x19a   :  { %164 = vrot.lane.b32.xlu1 %v1246_v32, %s1340_s23 }
 0x20c   :  { %v165_v40 = vpop.permute.xlu1 %164 }
 0x20d   :  { %v167_v41 = vmul.f32 %v165_v40, %v147_v24 }
 0x20f   :  { %169 = vrot.lane.b32.xlu1 %v167_v41, %s1341_s24 }
 0x281   :  { %v170_v44 = vpop.permute.xlu1 %169 }
 0x282   :  { %1192 = vmatmul.msk.f32.vlgmr.msra.gmra.mxu3 %vm105_vm6, %v170_v44  ;;  %v172_v45 = vsel %vm105_vm6, %v170_v44, 0.0 }
 0x283   :  { %1189 = vmatmul.msk.f32.vlgmr.msra.gmra.mxu2 %vm174_vm7, %v172_v45  ;;  %512 = vmatpush.msra.mxu3 %v1361_v0 }
 0x284   :  { %710 = vmatpush.msra.mxu2 %v1412_v33 }
 0x285   :  { %513 = vmatpush.msra.mxu3 %v1366_v1 }
 0x286   :  { %711 = vmatpush.msra.mxu2 %v1417_v34 }
 0x287   :  { %514 = vmatpush.msra.mxu3 %v1378_v4 }
 0x288   :  { %712 = vmatpush.msra.mxu2 %v1424_v35 }
 0x289   :  { %515 = vmatpush.msra.mxu3 %v1386_v5 }
 0x28a   :  { %713 = vmatpush.msra.mxu2 %v1432_v36 }
 0x28c   :  { %714 = vmatpush.msra.mxu2 %v1440_v37 }
 0x28e   :  { %715 = vmatpush.msra.mxu2 %v1448_v38 }
 0x290   :  { %716 = vmatpush.msra.mxu2 %v1456_v39 }
 0x292   :  { %717 = vmatpush.msra.mxu2 %v1469_v42 }
 0x305   :  { %v255_v49 = vpop.f32.mrf.mxu3 }
 0x306   :  { %v258_v50 = vadd.f32 %v255_v49, %v76_v47  ;;  %v195_v51 = vpop.f32.mrf.mxu2  ;;  %v19_v49 = vld [vmem:[%s1732_s0 + $0x10] sm:$0xff] }
 0x307   :  { %v196_v52 = vadd.f32 %v1513_v48, %v195_v51  ;;  %1181 = vmatmul.msk.f32.gmra.mxu0 %vm26_vm1, %v19_v49 }
 0x308   :  { %v1193_v53 = vmul.f32 -1.442695, %v258_v50 }
 0x309   :  { %v1190_v54 = vmul.f32 -1.442695, %v196_v52 }
 0x30a   :  { %1247 = vpow2.f32 %v1193_v53 }
 0x30b   :  { %1249 = vpow2.f32 %v1190_v54 }
 0x310   :  { %v1248_v55 = vpop.eup %1247 }
 0x311   :  { %v1250_v56 = vpop.eup %1249  ;;  %v262_v57 = vadd.f32 1.0, %v1248_v55 }
 0x312   :  { %v201_v58 = vadd.f32 1.0, %v1250_v56 }
 0x313   :  { %1251 = vrcp.f32 %v262_v57  ;;  %v274_v3 = vand.u32 2147483648, %v262_v57  ;;  %v272_v8 = vand.u32 2147483647, %v262_v57  ;;  %vm268_vm9 = vweird.f32 %v262_v57 }
 0x314   :  { %1253 = vrcp.f32 %v201_v58  ;;  %v213_v13 = vand.u32 2147483648, %v201_v58  ;;  %vm207_vm13 = vweird.f32 %v201_v58  ;;  %v211_v15 = vand.u32 2147483647, %v201_v58 }
 0x315   :  { %v275_v11 = vor.u32 1.1754944e-38, %v274_v3  ;;  %vm273_vm12 = vcmp.eq.f32.partialorder %v272_v8, 8.507059e+37 }
 0x316   :  { %v214_v19 = vor.u32 1.1754944e-38, %v213_v13  ;;  %vm212_vm15 = vcmp.eq.f32.partialorder %v211_v15, 8.507059e+37 }
 0x319   :  { %v1252_v59 = vpop.eup %1251 }
 0x31a   :  { %v1254_v60 = vpop.eup %1253  ;;  %v264_v61 = vmul.f32 %v1252_v59, %v262_v57  ;;  %vm269_vm8 = vweird.f32 %v1252_v59 }
 0x31b   :  { %v203_v62 = vmul.f32 %v1254_v60, %v201_v58  ;;  %vm208_vm10 = vweird.f32 %v1254_v60  ;;  %vm270_vm11 = vmor %vm268_vm9, %vm269_vm8 }
 0x31c   :  { %v265_v63 = vsub.f32 1.0, %v264_v61  ;;  %vm209_vm14 = vmor %vm207_vm13, %vm208_vm10 }
 0x31d   :  { %v204_v2 = vsub.f32 1.0, %v203_v62 }
 0x31e   :  { %v266_v6 = vmul.f32 %v1252_v59, %v265_v63 }
 0x31f   :  { %v205_v9 = vmul.f32 %v1254_v60, %v204_v2 }
 0x320   :  { %v267_v10 = vadd.f32 %v1252_v59, %v266_v6 }
 0x321   :  { %v206_v12 = vadd.f32 %v1254_v60, %v205_v9 }
 0x322   :  { %v271_v14 = vsel %vm270_vm11, %v1252_v59, %v267_v10 }
 0x323   :  { %v276_v16 = vsel %vm273_vm12, %v275_v11, %v271_v14  ;;  %v210_v18 = vsel %vm209_vm14, %v1254_v60, %v206_v12 }
 0x324   :  { %v278_v17 = vmul.f32 2.0, %v276_v16  ;;  %v215_v21 = vsel %vm212_vm15, %v214_v19, %v210_v18  ;;  %v280_v28 = vmul.f32 %v276_v16, %v1405_v31 }
 0x325   :  { %v217_v22 = vmul.f32 2.0, %v215_v21  ;;  %v219_v32 = vmul.f32 0.0, %v215_v21 }
 0x326   :  { %v1194_v20 = vadd.f32 -1.0, %v278_v17 }
 0x327   :  { %v1191_v23 = vadd.f32 -1.0, %v217_v22 }
 0x328   :  { %282 = vrot.lane.b32.xlu2 %v1194_v20, %s1340_s23 }
 0x330   :  { %221 = vrot.lane.b32.xlu2 %v1191_v23, %s1340_s23 }
 0x382   :  { %v283_v24 = vpop.permute.xlu2 %282 }
 0x383   :  { %v285_v25 = vmul.f32 %v283_v24, %v276_v16 }
 0x384   :  { %v78_v53 = vpop.f32.mrf.mxu0 }
 0x385   :  { %287 = vrot.lane.b32.xlu0 %v285_v25, %s1341_s24  ;;  %v79_v54 = vadd.f32 %v1400_v7, %v78_v53 }
 0x38a   :  { %v222_v26 = vpop.permute.xlu2 %221 }
 0x38b   :  { %v224_v27 = vmul.f32 %v222_v26, %v215_v21 }
 0x38d   :  { %226 = vrot.lane.b32.xlu1 %v224_v27, %s1341_s24 }
 0x3f7   :  { %v288_v29 = vpop.permute.xlu0 %287 }
 0x3f8   :  { %v1521_v30 = vadd.f32 %v288_v29, %v280_v28 }
 0x3fa   :  { %1255 = vtanh.f32 %v1521_v30 }
 0x3ff   :  { %v227_v40 = vpop.permute.xlu1 %226 }
 0x400   :  { %v1256_v41 = vpop.eup %1255  ;;  %v1524_v43 = vadd.f32 %v227_v40, %v219_v32 }
 0x401   :  { %293 = vrot.lane.b32.xlu2 %v1256_v41, %s1340_s23 }
 0x402   :  { %1257 = vtanh.f32 %v1524_v43 }
 0x408   :  { %v1258_v44 = vpop.eup %1257 }
 0x409   :  { %232 = vrot.lane.b32.xlu0 %v1258_v44, %s1340_s23 }
 0x45b   :  { %v294_v45 = vpop.permute.xlu2 %293 }
 0x45c   :  { %v296_v46 = vmul.f32 %v294_v45, %v276_v16 }
 0x45e   :  { %298 = vrot.lane.b32.xlu1 %v296_v46, %s1341_s24 }
 0x47b   :  { %v233_v31 = vpop.permute.xlu0 %232 }
 0x47c   :  { %v235_v47 = vmul.f32 %v233_v31, %v215_v21 }
 0x47e   :  { %302 = vrot.lane.b32.xlu2 %v235_v47, %s1340_s23 }
 0x4d0   :  { %v299_v50 = vpop.permute.xlu1 %298 }
 0x4d1   :  { %1198 = vmatmul.msk.f32.vlgmr.msrb.gmra.mxu3 %vm105_vm6, %v299_v50 }
 0x4d2   :  { %643 = vmatpush.msrb.mxu3 %v1361_v0 }
 0x4d4   :  { %644 = vmatpush.msrb.mxu3 %v1366_v1 }
 0x4d6   :  { %645 = vmatpush.msrb.mxu3 %v1378_v4 }
 0x4d8   :  { %v303_v51 = vpop.permute.xlu2 %302  ;;  %646 = vmatpush.msrb.mxu3 %v1386_v5 }
 0x4d9   :  { %v305_v52 = vsel %vm105_vm6, %v299_v50, %v303_v51 }
 0x4da   :  { %1195 = vmatmul.msk.f32.vlgmr.msrb.gmra.mxu1 %vm174_vm7, %v305_v52 }
 0x4db   :  { %841 = vmatpush.msrb.mxu1 %v1412_v33 }
 0x4dd   :  { %842 = vmatpush.msrb.mxu1 %v1417_v34 }
 0x4df   :  { %843 = vmatpush.msrb.mxu1 %v1424_v35 }
 0x4e1   :  { %844 = vmatpush.msrb.mxu1 %v1432_v36 }
 0x4e3   :  { %845 = vmatpush.msrb.mxu1 %v1440_v37 }
 0x4e5   :  { %846 = vmatpush.msrb.mxu1 %v1448_v38 }
 0x4e7   :  { %847 = vmatpush.msrb.mxu1 %v1456_v39 }
 0x4e9   :  { %848 = vmatpush.msrb.mxu1 %v1469_v42 }
 0x554   :  { %v386_v55 = vpop.f32.mrf.mxu3 }
 0x555   :  { %v389_v56 = vadd.f32 %v386_v55, %v79_v54 }
 0x557   :  { %v1199_v57 = vmul.f32 -1.442695, %v389_v56  ;;  %v326_v58 = vpop.f32.mrf.mxu1 }
 0x558   :  { %v327_v59 = vadd.f32 %v1513_v48, %v326_v58 }
 0x559   :  { %1259 = vpow2.f32 %v1199_v57 }
 0x55a   :  { %v1196_v60 = vmul.f32 -1.442695, %v327_v59 }
 0x55c   :  { %1261 = vpow2.f32 %v1196_v60 }
 0x55f   :  { %v1260_v61 = vpop.eup %1259 }
 0x560   :  { %v393_v62 = vadd.f32 1.0, %v1260_v61 }
 0x562   :  { %v1262_v63 = vpop.eup %1261  ;;  %1263 = vrcp.f32 %v393_v62  ;;  %v405_v11 = vand.u32 2147483648, %v393_v62  ;;  %v403_v13 = vand.u32 2147483647, %v393_v62  ;;  %vm399_vm2 = vweird.f32 %v393_v62 }
 0x563   :  { %v332_v2 = vadd.f32 1.0, %v1262_v63 }
 0x564   :  { %v406_v17 = vor.u32 1.1754944e-38, %v405_v11  ;;  %vm404_vm5 = vcmp.eq.f32.partialorder %v403_v13, 8.507059e+37 }
 0x565   :  { %1265 = vrcp.f32 %v332_v2  ;;  %v344_v16 = vand.u32 2147483648, %v332_v2  ;;  %v342_v19 = vand.u32 2147483647, %v332_v2  ;;  %vm338_vm8 = vweird.f32 %v332_v2 }
 0x567   :  { %v345_v24 = vor.u32 1.1754944e-38, %v344_v16  ;;  %vm343_vm10 = vcmp.eq.f32.partialorder %v342_v19, 8.507059e+37 }
 0x568   :  { %v1264_v3 = vpop.eup %1263 }
 0x569   :  { %v395_v6 = vmul.f32 %v1264_v3, %v393_v62  ;;  %vm400_vm0 = vweird.f32 %v1264_v3 }
 0x56a   :  { %vm401_vm3 = vmor %vm399_vm2, %vm400_vm0 }
 0x56b   :  { %v1266_v8 = vpop.eup %1265  ;;  %v396_v9 = vsub.f32 1.0, %v395_v6 }
 0x56c   :  { %v334_v10 = vmul.f32 %v1266_v8, %v332_v2  ;;  %vm339_vm4 = vweird.f32 %v1266_v8 }
 0x56d   :  { %v397_v12 = vmul.f32 %v1264_v3, %v396_v9  ;;  %vm340_vm9 = vmor %vm338_vm8, %vm339_vm4 }
 0x56e   :  { %v335_v14 = vsub.f32 1.0, %v334_v10 }
 0x56f   :  { %v398_v15 = vadd.f32 %v1264_v3, %v397_v12 }
 0x570   :  { %v336_v18 = vmul.f32 %v1266_v8, %v335_v14 }
 0x571   :  { %v402_v20 = vsel %vm401_vm3, %v1264_v3, %v398_v15 }
 0x572   :  { %v407_v21 = vsel %vm404_vm5, %v406_v17, %v402_v20  ;;  %v337_v22 = vadd.f32 %v1266_v8, %v336_v18 }
 0x573   :  { %v409_v23 = vmul.f32 2.0, %v407_v21  ;;  %v411_v45 = vmul.f32 %v407_v21, %v1521_v30 }
 0x574   :  { %v341_v25 = vsel %vm340_vm9, %v1266_v8, %v337_v22 }
 0x575   :  { %v1200_v26 = vadd.f32 -1.0, %v409_v23  ;;  %v346_v27 = vsel %vm343_vm10, %v345_v24, %v341_v25 }
 0x576   :  { %v348_v28 = vmul.f32 2.0, %v346_v27  ;;  %v350_v49 = vmul.f32 %v346_v27, %v1524_v43  ;;  %v20_v43 = vld [vmem:[%s1732_s0 + $0x18] sm:$0xff] }
 0x577   :  { %413 = vrot.lane.b32.xlu0 %v1200_v26, %s1340_s23  ;;  %1182 = vmatmul.msk.f32.gmra.mxu0 %vm26_vm1, %v20_v43 }
 0x578   :  { %v1197_v29 = vadd.f32 -1.0, %v348_v28 }
 0x57a   :  { %352 = vrot.lane.b32.xlu1 %v1197_v29, %s1340_s23 }
 0x5e9   :  { %v414_v32 = vpop.permute.xlu0 %413 }
 0x5ea   :  { %v416_v40 = vmul.f32 %v414_v32, %v407_v21 }
 0x5ec   :  { %418 = vrot.lane.b32.xlu2 %v416_v40, %s1341_s24  ;;  %v353_v41 = vpop.permute.xlu1 %352 }
 0x5ed   :  { %v355_v44 = vmul.f32 %v353_v41, %v346_v27 }
 0x5ef   :  { %357 = vrot.lane.b32.xlu0 %v355_v44, %s1341_s24 }
 0x5f4   :  { %v81_v59 = vpop.f32.mrf.mxu0 }
 0x5f5   :  { %v82_v60 = vadd.f32 %v1400_v7, %v81_v59 }
 0x646   :  { %v419_v46 = vpop.permute.xlu2 %418 }
 0x647   :  { %v1557_v31 = vadd.f32 %v419_v46, %v411_v45 }
 0x649   :  { %1267 = vtanh.f32 %v1557_v31 }
 0x64f   :  { %v1268_v47 = vpop.eup %1267 }
 0x650   :  { %424 = vrot.lane.b32.xlu1 %v1268_v47, %s1340_s23 }
 0x661   :  { %v358_v50 = vpop.permute.xlu0 %357 }
 0x662   :  { %v1562_v51 = vadd.f32 %v358_v50, %v350_v49 }
 0x664   :  { %1269 = vtanh.f32 %v1562_v51 }
 0x66a   :  { %v1270_v52 = vpop.eup %1269 }
 0x66b   :  { %363 = vrot.lane.b32.xlu2 %v1270_v52, %s1340_s23 }
 0x6c2   :  { %v425_v53 = vpop.permute.xlu1 %424 }
 0x6c3   :  { %v427_v30 = vmul.f32 %v425_v53, %v407_v21 }
 0x6c5   :  { %429 = vrot.lane.b32.xlu0 %v427_v30, %s1341_s24  ;;  %v364_v54 = vpop.permute.xlu2 %363 }
 0x6c6   :  { %v366_v55 = vmul.f32 %v364_v54, %v346_v27 }
 0x6c8   :  { %433 = vrot.lane.b32.xlu1 %v366_v55, %s1340_s23 }
 0x737   :  { %v430_v56 = vpop.permute.xlu0 %429 }
 0x738   :  { %1204 = vmatmul.msk.f32.vlgmr.msra.gmra.mxu3 %vm105_vm6, %v430_v56 }
 0x739   :  { %774 = vmatpush.msra.mxu3 %v1361_v0 }
 0x73a   :  { %v434_v57 = vpop.permute.xlu1 %433 }
 0x73b   :  { %v436_v58 = vsel %vm105_vm6, %v430_v56, %v434_v57  ;;  %775 = vmatpush.msra.mxu3 %v1366_v1 }
 0x73c   :  { %1201 = vmatmul.msk.f32.vlgmr.msrb.gmra.mxu2 %vm174_vm7, %v436_v58 }
 0x73d   :  { %776 = vmatpush.msra.mxu3 %v1378_v4  ;;  %972 = vmatpush.msrb.mxu2 %v1412_v33 }
 0x73f   :  { %777 = vmatpush.msra.mxu3 %v1386_v5  ;;  %973 = vmatpush.msrb.mxu2 %v1417_v34 }
 0x741   :  { %974 = vmatpush.msrb.mxu2 %v1424_v35 }
 0x743   :  { %975 = vmatpush.msrb.mxu2 %v1432_v36 }
 0x745   :  { %976 = vmatpush.msrb.mxu2 %v1440_v37 }
 0x747   :  { %977 = vmatpush.msrb.mxu2 %v1448_v38 }
 0x749   :  { %978 = vmatpush.msrb.mxu2 %v1456_v39 }
 0x74b   :  { %979 = vmatpush.msrb.mxu2 %v1469_v42 }
 0x7bb   :  { %v517_v33 = vpop.f32.mrf.mxu3 }
 0x7bc   :  { %v520_v61 = vadd.f32 %v517_v33, %v82_v60 }
 0x7be   :  { %v1205_v62 = vmul.f32 -1.442695, %v520_v61 }
 0x7bf   :  { %v457_v63 = vpop.f32.mrf.mxu2 }
 0x7c0   :  { %1271 = vpow2.f32 %v1205_v62  ;;  %v458_v34 = vadd.f32 %v1513_v48, %v457_v63 }
 0x7c2   :  { %v1202_v35 = vmul.f32 -1.442695, %v458_v34 }
 0x7c4   :  { %1273 = vpow2.f32 %v1202_v35 }
 0x7c6   :  { %v1272_v36 = vpop.eup %1271 }
 0x7c7   :  { %v524_v37 = vadd.f32 1.0, %v1272_v36 }
 0x7c9   :  { %1275 = vrcp.f32 %v524_v37  ;;  %v534_v8 = vand.u32 2147483647, %v524_v37  ;;  %v536_v9 = vand.u32 2147483648, %v524_v37  ;;  %vm530_vm12 = vweird.f32 %v524_v37 }
 0x7ca   :  { %v1274_v38 = vpop.eup %1273 }
 0x7cb   :  { %v463_v2 = vadd.f32 1.0, %v1274_v38  ;;  %vm535_vm14 = vcmp.eq.f32.partialorder %v534_v8, 8.507059e+37  ;;  %v537_v14 = vor.u32 1.1754944e-38, %v536_v9 }
 0x7cd   :  { %1277 = vrcp.f32 %v463_v2  ;;  %v475_v15 = vand.u32 2147483648, %v463_v2  ;;  %v473_v18 = vand.u32 2147483647, %v463_v2  ;;  %vm469_vm0 = vweird.f32 %v463_v2 }
 0x7cf   :  { %v1276_v39 = vpop.eup %1275  ;;  %v476_v22 = vor.u32 1.1754944e-38, %v475_v15  ;;  %vm474_vm3 = vcmp.eq.f32.partialorder %v473_v18, 8.507059e+37 }
 0x7d0   :  { %v526_v42 = vmul.f32 %v1276_v39, %v524_v37  ;;  %vm531_vm11 = vweird.f32 %v1276_v39 }
 0x7d1   :  { %vm532_vm13 = vmor %vm530_vm12, %vm531_vm11 }
 0x7d2   :  { %v527_v3 = vsub.f32 1.0, %v526_v42 }
 0x7d3   :  { %v1278_v6 = vpop.eup %1277 }
 0x7d4   :  { %v465_v10 = vmul.f32 %v1278_v6, %v463_v2  ;;  %v528_v11 = vmul.f32 %v1276_v39, %v527_v3  ;;  %vm470_vm15 = vweird.f32 %v1278_v6 }
 0x7d5   :  { %vm471_vm2 = vmor %vm469_vm0, %vm470_vm15 }
 0x7d6   :  { %v466_v12 = vsub.f32 1.0, %v465_v10  ;;  %v529_v13 = vadd.f32 %v1276_v39, %v528_v11 }
 0x7d8   :  { %v533_v16 = vsel %vm532_vm13, %v1276_v39, %v529_v13  ;;  %v467_v17 = vmul.f32 %v1278_v6, %v466_v12 }
 0x7d9   :  { %v538_v19 = vsel %vm535_vm14, %v537_v14, %v533_v16 }
 0x7da   :  { %v540_v20 = vmul.f32 2.0, %v538_v19  ;;  %v468_v21 = vadd.f32 %v1278_v6, %v467_v17  ;;  %v542_v41 = vmul.f32 %v538_v19, %v1557_v31 }
 0x7dc   :  { %v1206_v23 = vadd.f32 -1.0, %v540_v20  ;;  %v472_v24 = vsel %vm471_vm2, %v1278_v6, %v468_v21 }
 0x7dd   :  { %v477_v25 = vsel %vm474_vm3, %v476_v22, %v472_v24 }
 0x7de   :  { %544 = vrot.lane.b32.xlu2 %v1206_v23, %s1340_s23  ;;  %v479_v26 = vmul.f32 2.0, %v477_v25  ;;  %v481_v46 = vmul.f32 %v477_v25, %v1562_v51  ;;  %v21_v51 = vld [vmem:[%s1732_s0 + $0x20] sm:$0xff] }
 0x7df   :  { %1183 = vmatmul.msk.f32.gmra.mxu0 %vm26_vm1, %v21_v51 }
 0x7e0   :  { %v1203_v27 = vadd.f32 -1.0, %v479_v26 }
 0x7e2   :  { %483 = vrot.lane.b32.xlu0 %v1203_v27, %s1340_s23 }
 0x838   :  { %v545_v28 = vpop.permute.xlu2 %544 }
 0x839   :  { %v547_v29 = vmul.f32 %v545_v28, %v538_v19 }
 0x83b   :  { %549 = vrot.lane.b32.xlu1 %v547_v29, %s1341_s24 }
 0x854   :  { %v484_v32 = vpop.permute.xlu0 %483 }
 0x855   :  { %v486_v40 = vmul.f32 %v484_v32, %v477_v25 }
 0x857   :  { %488 = vrot.lane.b32.xlu2 %v486_v40, %s1341_s24 }
 0x85c   :  { %v84_v57 = vpop.f32.mrf.mxu0 }
 0x85d   :  { %v85_v58 = vadd.f32 %v1400_v7, %v84_v57 }
 0x8ad   :  { %v550_v44 = vpop.permute.xlu1 %549 }
 0x8ae   :  { %v1594_v45 = vadd.f32 %v550_v44, %v542_v41 }
 0x8b0   :  { %1279 = vtanh.f32 %v1594_v45 }
 0x8b1   :  { %v489_v47 = vpop.permute.xlu2 %488 }
 0x8b2   :  { %v1598_v49 = vadd.f32 %v489_v47, %v481_v46 }
 0x8b4   :  { %1281 = vtanh.f32 %v1598_v49 }
 0x8b6   :  { %v1280_v50 = vpop.eup %1279 }
 0x8b7   :  { %555 = vrot.lane.b32.xlu0 %v1280_v50, %s1340_s23 }
 0x8ba   :  { %v1282_v52 = vpop.eup %1281 }
 0x8bb   :  { %494 = vrot.lane.b32.xlu1 %v1282_v52, %s1340_s23 }
 0x929   :  { %v556_v53 = vpop.permute.xlu0 %555 }
 0x92a   :  { %v558_v31 = vmul.f32 %v556_v53, %v538_v19 }
 0x92c   :  { %560 = vrot.lane.b32.xlu2 %v558_v31, %s1341_s24 }
 0x92d   :  { %v495_v30 = vpop.permute.xlu1 %494 }
 0x92e   :  { %v497_v54 = vmul.f32 %v495_v30, %v477_v25  ;;  %v22_v30 = vld [vmem:[%s1732_s0 + $0x28] sm:$0xff] }
 0x92f   :  { %1184 = vmatmul.msk.f32.gmra.mxu0 %vm26_vm1, %v22_v30  ;;  %v1674_v30 = vld [vmem:[%s1731_s1 + $0x28] ss:$0 sm:$0xff] }
 0x930   :  { %564 = vrot.lane.b32.xlu0 %v497_v54, %s1340_s23 }
 0x986   :  { %v561_v55 = vpop.permute.xlu2 %560 }
 0x987   :  { %1210 = vmatmul.msk.f32.vlgmr.msrb.gmra.mxu3 %vm105_vm6, %v561_v55 }
 0x988   :  { %905 = vmatpush.msrb.mxu3 %v1361_v0 }
 0x98a   :  { %906 = vmatpush.msrb.mxu3 %v1366_v1 }
 0x98c   :  { %907 = vmatpush.msrb.mxu3 %v1378_v4 }
 0x98e   :  { %908 = vmatpush.msrb.mxu3 %v1386_v5 }
 0x9a2   :  { %v565_v43 = vpop.permute.xlu0 %564 }
 0x9a3   :  { %v567_v56 = vsel %vm105_vm6, %v561_v55, %v565_v43 }
 0x9a4   :  { %1207 = vmatmul.msk.f32.vlgmr.msra.gmra.mxu1 %vm174_vm7, %v567_v56 }
 0x9ac   :  { %v87_v43 = vpop.f32.mrf.mxu0 }
 0x9ad   :  { %v88_v56 = vadd.f32 %v1400_v7, %v87_v43 }
 0xa0a   :  { %v648_v59 = vpop.f32.mrf.mxu3 }
 0xa0b   :  { %v651_v60 = vadd.f32 %v648_v59, %v85_v58 }
 0xa0d   :  { %v1211_v33 = vmul.f32 -1.442695, %v651_v60 }
 0xa0f   :  { %1283 = vpow2.f32 %v1211_v33 }
 0xa15   :  { %v1284_v61 = vpop.eup %1283 }
 0xa16   :  { %v655_v62 = vadd.f32 1.0, %v1284_v61 }
 0xa18   :  { %1285 = vrcp.f32 %v655_v62  ;;  %v667_v38 = vand.u32 2147483648, %v655_v62  ;;  %v665_v39 = vand.u32 2147483647, %v655_v62  ;;  %vm661_vm5 = vweird.f32 %v655_v62 }
 0xa1a   :  { %v668_v6 = vor.u32 1.1754944e-38, %v667_v38  ;;  %vm666_vm9 = vcmp.eq.f32.partialorder %v665_v39, 8.507059e+37 }
 0xa1e   :  { %v1286_v63 = vpop.eup %1285 }
 0xa1f   :  { %v657_v34 = vmul.f32 %v1286_v63, %v655_v62  ;;  %vm662_vm4 = vweird.f32 %v1286_v63 }
 0xa20   :  { %vm663_vm8 = vmor %vm661_vm5, %vm662_vm4 }
 0xa21   :  { %v658_v35 = vsub.f32 1.0, %v657_v34  ;;  %v588_v36 = vpop.f32.mrf.mxu1 }
 0xa22   :  { %v589_v37 = vadd.f32 %v1513_v48, %v588_v36 }
 0xa23   :  { %v659_v2 = vmul.f32 %v1286_v63, %v658_v35 }
 0xa24   :  { %v1208_v42 = vmul.f32 -1.442695, %v589_v37 }
 0xa25   :  { %v660_v3 = vadd.f32 %v1286_v63, %v659_v2 }
 0xa26   :  { %1287 = vpow2.f32 %v1208_v42 }
 0xa27   :  { %v664_v8 = vsel %vm663_vm8, %v1286_v63, %v660_v3 }
 0xa28   :  { %v669_v9 = vsel %vm666_vm9, %v668_v6, %v664_v8 }
 0xa29   :  { %v671_v10 = vmul.f32 2.0, %v669_v9  ;;  %v673_v41 = vmul.f32 %v669_v9, %v1594_v45 }
 0xa2b   :  { %v1212_v11 = vadd.f32 -1.0, %v671_v10 }
 0xa2c   :  { %v1288_v12 = vpop.eup %1287 }
 0xa2d   :  { %v594_v13 = vadd.f32 1.0, %v1288_v12  ;;  %675 = vrot.lane.b32.xlu1 %v1212_v11, %s1340_s23 }
 0xa2f   :  { %1289 = vrcp.f32 %v594_v13  ;;  %v606_v17 = vand.u32 2147483648, %v594_v13  ;;  %v604_v19 = vand.u32 2147483647, %v594_v13  ;;  %vm600_vm11 = vweird.f32 %v594_v13 }
 0xa31   :  { %v607_v21 = vor.u32 1.1754944e-38, %v606_v17  ;;  %vm605_vm13 = vcmp.eq.f32.partialorder %v604_v19, 8.507059e+37 }
 0xa35   :  { %v1290_v14 = vpop.eup %1289 }
 0xa36   :  { %v596_v15 = vmul.f32 %v1290_v14, %v594_v13  ;;  %vm601_vm10 = vweird.f32 %v1290_v14 }
 0xa37   :  { %vm602_vm12 = vmor %vm600_vm11, %vm601_vm10 }
 0xa38   :  { %v597_v16 = vsub.f32 1.0, %v596_v15 }
 0xa3a   :  { %v598_v18 = vmul.f32 %v1290_v14, %v597_v16 }
 0xa3c   :  { %v599_v20 = vadd.f32 %v1290_v14, %v598_v18 }
 0xa3e   :  { %v603_v22 = vsel %vm602_vm12, %v1290_v14, %v599_v20 }
 0xa3f   :  { %v608_v23 = vsel %vm605_vm13, %v607_v21, %v603_v22 }
 0xa40   :  { %v610_v24 = vmul.f32 2.0, %v608_v23  ;;  %v612_v32 = vmul.f32 %v608_v23, %v1598_v49 }
 0xa42   :  { %v1209_v25 = vadd.f32 -1.0, %v610_v24 }
 0xa44   :  { %614 = vrot.lane.b32.xlu2 %v1209_v25, %s1340_s23 }
 0xa9e   :  { %v615_v26 = vpop.permute.xlu2 %614 }
 0xa9f   :  { %v617_v27 = vmul.f32 %v615_v26, %v608_v23  ;;  %v676_v28 = vpop.permute.xlu1 %675 }
 0xaa0   :  { %v678_v29 = vmul.f32 %v676_v28, %v669_v9 }
 0xaa1   :  { %619 = vrot.lane.b32.xlu1 %v617_v27, %s1341_s24 }
 0xaa2   :  { %680 = vrot.lane.b32.xlu0 %v678_v29, %s1341_s24 }
 0xb13   :  { %v620_v40 = vpop.permute.xlu1 %619 }
 0xb14   :  { %v1624_v44 = vadd.f32 %v620_v40, %v612_v32  ;;  %v681_v46 = vpop.permute.xlu0 %680 }
 0xb15   :  { %v1626_v47 = vadd.f32 %v681_v46, %v673_v41 }
 0xb16   :  { %1291 = vtanh.f32 %v1624_v44 }
 0xb17   :  { %1293 = vtanh.f32 %v1626_v47 }
 0xb1c   :  { %v1292_v50 = vpop.eup %1291 }
 0xb1d   :  { %v1294_v52 = vpop.eup %1293  ;;  %625 = vrot.lane.b32.xlu0 %v1292_v50, %s1340_s23 }
 0xb1e   :  { %686 = vrot.lane.b32.xlu2 %v1294_v52, %s1340_s23 }
 0xb78   :  { %v687_v53 = vpop.permute.xlu2 %686 }
 0xb79   :  { %v689_v49 = vmul.f32 %v687_v53, %v669_v9 }
 0xb7b   :  { %691 = vrot.lane.b32.xlu1 %v689_v49, %s1341_s24 }
 0xb8f   :  { %v626_v45 = vpop.permute.xlu0 %625 }
 0xb90   :  { %v628_v31 = vmul.f32 %v626_v45, %v608_v23 }
 0xb92   :  { %695 = vrot.lane.b32.xlu2 %v628_v31, %s1340_s23 }
 0xbec   :  { %v696_v54 = vpop.permute.xlu2 %695 }
 0xbed   :  { %v692_v51 = vpop.permute.xlu1 %691 }
 0xbee   :  { %v698_v55 = vsel %vm105_vm6, %v692_v51, %v696_v54  ;;  %1216 = vmatmul.msk.f32.vlgmr.msra.gmra.mxu3 %vm105_vm6, %v692_v51 }
 0xbef   :  { %1213 = vmatmul.msk.f32.vlgmr.msra.gmra.mxu2 %vm174_vm7, %v698_v55  ;;  %1036 = vmatpush.msra.mxu3 %v1361_v0 }
 0xbf1   :  { %1037 = vmatpush.msra.mxu3 %v1366_v1 }
 0xbf3   :  { %1038 = vmatpush.msra.mxu3 %v1378_v4 }
 0xbf5   :  { %1039 = vmatpush.msra.mxu3 %v1386_v5 }
 0xc71   :  { %v779_v57 = vpop.f32.mrf.mxu3 }
 0xc72   :  { %v782_v58 = vadd.f32 %v779_v57, %v88_v56  ;;  %v719_v59 = vpop.f32.mrf.mxu2 }
 0xc73   :  { %v720_v60 = vadd.f32 %v1513_v48, %v719_v59 }
 0xc74   :  { %v1217_v33 = vmul.f32 -1.442695, %v782_v58 }
 0xc75   :  { %v1214_v61 = vmul.f32 -1.442695, %v720_v60 }
 0xc76   :  { %1295 = vpow2.f32 %v1217_v33 }
 0xc77   :  { %1297 = vpow2.f32 %v1214_v61 }
 0xc7c   :  { %v1296_v62 = vpop.eup %1295 }
 0xc7d   :  { %v1298_v0 = vpop.eup %1297  ;;  %v786_v63 = vadd.f32 1.0, %v1296_v62 }
 0xc7e   :  { %v725_v1 = vadd.f32 1.0, %v1298_v0 }
 0xc7f   :  { %1299 = vrcp.f32 %v786_v63  ;;  %v798_v37 = vand.u32 2147483648, %v786_v63  ;;  %v796_v2 = vand.u32 2147483647, %v786_v63  ;;  %vm792_vm0 = vweird.f32 %v786_v63 }
 0xc80   :  { %1301 = vrcp.f32 %v725_v1  ;;  %v737_v39 = vand.u32 2147483648, %v725_v1  ;;  %v735_v3 = vand.u32 2147483647, %v725_v1  ;;  %vm731_vm3 = vweird.f32 %v725_v1 }
 0xc81   :  { %v799_v8 = vor.u32 1.1754944e-38, %v798_v37  ;;  %vm797_vm4 = vcmp.eq.f32.partialorder %v796_v2, 8.507059e+37 }
 0xc82   :  { %v738_v11 = vor.u32 1.1754944e-38, %v737_v39  ;;  %vm736_vm8 = vcmp.eq.f32.partialorder %v735_v3, 8.507059e+37 }
 0xc85   :  { %v1300_v4 = vpop.eup %1299 }
 0xc86   :  { %v1302_v5 = vpop.eup %1301  ;;  %v788_v34 = vmul.f32 %v1300_v4, %v786_v63  ;;  %vm793_vm14 = vweird.f32 %v1300_v4 }
 0xc87   :  { %v727_v35 = vmul.f32 %v1302_v5, %v725_v1  ;;  %vm732_vm15 = vweird.f32 %v1302_v5  ;;  %vm794_vm2 = vmor %vm792_vm0, %vm793_vm14 }
 0xc88   :  { %v789_v7 = vsub.f32 1.0, %v788_v34  ;;  %vm733_vm5 = vmor %vm731_vm3, %vm732_vm15 }
 0xc89   :  { %v728_v36 = vsub.f32 1.0, %v727_v35 }
 0xc8a   :  { %v790_v38 = vmul.f32 %v1300_v4, %v789_v7 }
 0xc8b   :  { %v729_v42 = vmul.f32 %v1302_v5, %v728_v36 }
 0xc8c   :  { %v791_v6 = vadd.f32 %v1300_v4, %v790_v38 }
 0xc8d   :  { %v730_v9 = vadd.f32 %v1302_v5, %v729_v42 }
 0xc8e   :  { %v795_v10 = vsel %vm794_vm2, %v1300_v4, %v791_v6 }
 0xc8f   :  { %v800_v12 = vsel %vm797_vm4, %v799_v8, %v795_v10  ;;  %v734_v13 = vsel %vm733_vm5, %v1302_v5, %v730_v9 }
 0xc90   :  { %v802_v14 = vmul.f32 2.0, %v800_v12  ;;  %v739_v15 = vsel %vm736_vm8, %v738_v11, %v734_v13  ;;  %v804_v23 = vmul.f32 %v800_v12, %v1626_v47 }
 0xc91   :  { %v741_v16 = vmul.f32 2.0, %v739_v15  ;;  %v743_v27 = vmul.f32 %v739_v15, %v1624_v44  ;;  %v23_v44 = vld [vmem:[%s1732_s0 + $0x30] sm:$0xff] }
 0xc92   :  { %v1218_v17 = vadd.f32 -1.0, %v802_v14  ;;  %1185 = vmatmul.msk.f32.gmra.mxu0 %vm26_vm1, %v23_v44 }
 0xc93   :  { %v1215_v18 = vadd.f32 -1.0, %v741_v16 }
 0xc94   :  { %806 = vrot.lane.b32.xlu0 %v1218_v17, %s1340_s23 }
 0xc95   :  { %745 = vrot.lane.b32.xlu1 %v1215_v18, %s1340_s23 }
 0xd06   :  { %v807_v19 = vpop.permute.xlu0 %806 }
 0xd07   :  { %v809_v20 = vmul.f32 %v807_v19, %v800_v12  ;;  %v746_v21 = vpop.permute.xlu1 %745 }
 0xd08   :  { %v748_v22 = vmul.f32 %v746_v21, %v739_v15 }
 0xd09   :  { %811 = vrot.lane.b32.xlu2 %v809_v20, %s1341_s24 }
 0xd0a   :  { %750 = vrot.lane.b32.xlu0 %v748_v22, %s1341_s24 }
 0xd0f   :  { %v90_v49 = vpop.f32.mrf.mxu0 }
 0xd10   :  { %v91_v54 = vadd.f32 %v1674_v30, %v90_v49 }
 0xd63   :  { %v812_v24 = vpop.permute.xlu2 %811 }
 0xd64   :  { %v1652_v25 = vadd.f32 %v812_v24, %v804_v23 }
 0xd66   :  { %1303 = vtanh.f32 %v1652_v25 }
 0xd6c   :  { %v1304_v26 = vpop.eup %1303 }
 0xd6d   :  { %817 = vrot.lane.b32.xlu1 %v1304_v26, %s1340_s23 }
 0xd7c   :  { %v751_v28 = vpop.permute.xlu0 %750 }
 0xd7d   :  { %v1657_v29 = vadd.f32 %v751_v28, %v743_v27 }
 0xd7f   :  { %1305 = vtanh.f32 %v1657_v29 }
 0xd85   :  { %v1306_v32 = vpop.eup %1305 }
 0xd86   :  { %756 = vrot.lane.b32.xlu2 %v1306_v32, %s1340_s23 }
 0xddf   :  { %v818_v40 = vpop.permute.xlu1 %817 }
 0xde0   :  { %v820_v41 = vmul.f32 %v818_v40, %v800_v12  ;;  %v757_v46 = vpop.permute.xlu2 %756 }
 0xde1   :  { %v759_v47 = vmul.f32 %v757_v46, %v739_v15 }
 0xde2   :  { %822 = vrot.lane.b32.xlu0 %v820_v41, %s1341_s24 }
 0xde3   :  { %826 = vrot.lane.b32.xlu1 %v759_v47, %s1340_s23 }
 0xe54   :  { %v823_v50 = vpop.permute.xlu0 %822 }
 0xe55   :  { %1222 = vmatmul.msk.f32.vlgmr.msrb.gmra.mxu3 %vm105_vm6, %v823_v50  ;;  %v827_v52 = vpop.permute.xlu1 %826 }
 0xe56   :  { %v829_v53 = vsel %vm105_vm6, %v823_v50, %v827_v52 }
 0xe57   :  { %1219 = vmatmul.msk.f32.vlgmr.msrb.gmra.mxu1 %vm174_vm7, %v829_v53 }
 0xed4   :  { %v850_v45 = vpop.f32.mrf.mxu1 }
 0xed5   :  { %v851_v31 = vadd.f32 %v1513_v48, %v850_v45 }
 0xed7   :  { %v1220_v51 = vmul.f32 -1.442695, %v851_v31 }
 0xed8   :  { %v910_v55 = vpop.f32.mrf.mxu3 }
 0xed9   :  { %1307 = vpow2.f32 %v1220_v51  ;;  %v913_v43 = vadd.f32 %v910_v55, %v91_v54  ;;  %v1704_v54 = vld [vmem:[%s1731_s1 + $0x70] ss:$0 sm:$0xff] }
 0xedb   :  { %v1223_v56 = vmul.f32 -1.442695, %v913_v43 }
 0xedd   :  { %1309 = vpow2.f32 %v1223_v56 }
 0xedf   :  { %v1308_v57 = vpop.eup %1307 }
 0xee0   :  { %v856_v58 = vadd.f32 1.0, %v1308_v57 }
 0xee2   :  { %1311 = vrcp.f32 %v856_v58  ;;  %v866_v0 = vand.u32 2147483647, %v856_v58  ;;  %v868_v63 = vand.u32 2147483648, %v856_v58  ;;  %vm862_vm10 = vweird.f32 %v856_v58 }
 0xee3   :  { %v1310_v59 = vpop.eup %1309 }
 0xee4   :  { %v917_v60 = vadd.f32 1.0, %v1310_v59  ;;  %vm867_vm12 = vcmp.eq.f32.partialorder %v866_v0, 8.507059e+37  ;;  %v869_v35 = vor.u32 1.1754944e-38, %v868_v63 }
 0xee6   :  { %1313 = vrcp.f32 %v917_v60  ;;  %v929_v7 = vand.u32 2147483648, %v917_v60  ;;  %v927_v38 = vand.u32 2147483647, %v917_v60  ;;  %vm923_vm14 = vweird.f32 %v917_v60 }
 0xee8   :  { %v1312_v48 = vpop.eup %1311  ;;  %v930_v3 = vor.u32 1.1754944e-38, %v929_v7  ;;  %vm928_vm0 = vcmp.eq.f32.partialorder %v927_v38, 8.507059e+37 }
 0xee9   :  { %v858_v33 = vmul.f32 %v1312_v48, %v856_v58  ;;  %vm863_vm9 = vweird.f32 %v1312_v48 }
 0xeea   :  { %vm864_vm11 = vmor %vm862_vm10, %vm863_vm9 }
 0xeeb   :  { %v859_v61 = vsub.f32 1.0, %v858_v33 }
 0xeec   :  { %v1314_v62 = vpop.eup %1313 }
 0xeed   :  { %v919_v1 = vmul.f32 %v1314_v62, %v917_v60  ;;  %v860_v4 = vmul.f32 %v1312_v48, %v859_v61  ;;  %vm924_vm13 = vweird.f32 %v1314_v62 }
 0xeee   :  { %vm925_vm15 = vmor %vm923_vm14, %vm924_vm13  ;;  %vm1172_vm14 = vcmask 7168  }
 0xeef   :  { %v920_v5 = vsub.f32 1.0, %v919_v1  ;;  %v861_v34 = vadd.f32 %v1312_v48, %v860_v4 }
 0xef1   :  { %v865_v36 = vsel %vm864_vm11, %v1312_v48, %v861_v34  ;;  %v921_v37 = vmul.f32 %v1314_v62, %v920_v5 }
 0xef2   :  { %v870_v2 = vsel %vm867_vm12, %v869_v35, %v865_v36 }
 0xef3   :  { %v872_v39 = vmul.f32 2.0, %v870_v2  ;;  %v922_v42 = vadd.f32 %v1314_v62, %v921_v37  ;;  %v874_v16 = vmul.f32 %v870_v2, %v1657_v29 }
 0xef5   :  { %v1221_v6 = vadd.f32 -1.0, %v872_v39  ;;  %v926_v8 = vsel %vm925_vm15, %v1314_v62, %v922_v42 }
 0xef6   :  { %v931_v9 = vsel %vm928_vm0, %v930_v3, %v926_v8 }
 0xef7   :  { %876 = vrot.lane.b32.xlu2 %v1221_v6, %s1340_s23  ;;  %v933_v10 = vmul.f32 2.0, %v931_v9  ;;  %v935_v19 = vmul.f32 %v931_v9, %v1652_v25  ;;  %v24_v25 = vld [vmem:[%s1732_s0 + $0x38] sm:$0xff] }
 0xef8   :  { %1186 = vmatmul.msk.f32.gmra.mxu0 %vm26_vm1, %v24_v25 }
 0xef9   :  { %v1224_v11 = vadd.f32 -1.0, %v933_v10 }
 0xefb   :  { %937 = vrot.lane.b32.xlu0 %v1224_v11, %s1340_s23 }
 0xf51   :  { %v877_v12 = vpop.permute.xlu2 %876 }
 0xf52   :  { %v879_v13 = vmul.f32 %v877_v12, %v870_v2 }
 0xf54   :  { %881 = vrot.lane.b32.xlu1 %v879_v13, %s1341_s24 }
 0xf6d   :  { %v938_v14 = vpop.permute.xlu0 %937 }
 0xf6e   :  { %v940_v15 = vmul.f32 %v938_v14, %v931_v9 }
 0xf70   :  { %942 = vrot.lane.b32.xlu2 %v940_v15, %s1341_s24 }
 0xf75   :  { %v93_v41 = vpop.f32.mrf.mxu0 }
 0xf76   :  { %v94_v46 = vadd.f32 %v1674_v30, %v93_v41 }
 0xfc6   :  { %v882_v17 = vpop.permute.xlu1 %881 }
 0xfc7   :  { %v1682_v18 = vadd.f32 %v882_v17, %v874_v16 }
 0xfc9   :  { %1315 = vtanh.f32 %v1682_v18 }
 0xfca   :  { %v943_v20 = vpop.permute.xlu2 %942 }
 0xfcb   :  { %v1686_v21 = vadd.f32 %v943_v20, %v935_v19 }
 0xfcd   :  { %1317 = vtanh.f32 %v1686_v21 }
 0xfcf   :  { %v1316_v22 = vpop.eup %1315 }
 0xfd0   :  { %887 = vrot.lane.b32.xlu0 %v1316_v22, %s1340_s23 }
 0xfd3   :  { %v1318_v23 = vpop.eup %1317 }
 0xfd4   :  { %948 = vrot.lane.b32.xlu1 %v1318_v23, %s1340_s23 }
0x1042   :  { %v888_v24 = vpop.permute.xlu0 %887 }
0x1043   :  { %v890_v26 = vmul.f32 %v888_v24, %v870_v2 }
0x1045   :  { %957 = vrot.lane.b32.xlu0 %v890_v26, %s1340_s23 }
0x1046   :  { %v949_v27 = vpop.permute.xlu1 %948 }
0x1047   :  { %v951_v28 = vmul.f32 %v949_v27, %v931_v9 }
0x1049   :  { %953 = vrot.lane.b32.xlu2 %v951_v28, %s1341_s24 }
0x10a3   :  { %v954_v29 = vpop.permute.xlu2 %953 }
0x10a4   :  { %1228 = vmatmul.msk.f32.vlgmr.msra.gmra.mxu3 %vm105_vm6, %v954_v29 }
0x10b7   :  { %v958_v32 = vpop.permute.xlu0 %957 }
0x10b8   :  { %v960_v40 = vsel %vm105_vm6, %v954_v29, %v958_v32 }
0x10b9   :  { %1225 = vmatmul.msk.f32.vlgmr.msrb.gmra.mxu2 %vm174_vm7, %v960_v40 }
0x1127   :  { %v1041_v47 = vpop.f32.mrf.mxu3 }
0x1128   :  { %v1044_v44 = vadd.f32 %v1041_v47, %v94_v46 }
0x112a   :  { %v1229_v50 = vmul.f32 -1.442695, %v1044_v44 }
0x112c   :  { %1319 = vpow2.f32 %v1229_v50 }
0x1132   :  { %v1320_v52 = vpop.eup %1319 }
0x1133   :  { %v1048_v53 = vadd.f32 1.0, %v1320_v52 }
0x1135   :  { %1321 = vrcp.f32 %v1048_v53  ;;  %v1060_v30 = vand.u32 2147483648, %v1048_v53  ;;  %v1058_v57 = vand.u32 2147483647, %v1048_v53  ;;  %vm1054_vm2 = vweird.f32 %v1048_v53 }
0x1137   :  { %v1061_v59 = vor.u32 1.1754944e-38, %v1060_v30  ;;  %vm1059_vm4 = vcmp.eq.f32.partialorder %v1058_v57, 8.507059e+37 }
0x113b   :  { %v1322_v49 = vpop.eup %1321 }
0x113c   :  { %v1050_v45 = vmul.f32 %v1322_v49, %v1048_v53  ;;  %v981_v31 = vpop.f32.mrf.mxu2  ;;  %vm1055_vm1 = vweird.f32 %v1322_v49 }
0x113d   :  { %v982_v51 = vadd.f32 %v1704_v54, %v981_v31  ;;  %vm1056_vm3 = vmor %vm1054_vm2, %vm1055_vm1  ;;  %v1240_v31 = vld [vmem:[%s1731_s1 + $0x78] ss:$0 sm:$0xff] }
0x113e   :  { %v1051_v55 = vsub.f32 1.0, %v1050_v45 }
0x113f   :  { %v1226_v43 = vmul.f32 -1.442695, %v982_v51 }
0x1140   :  { %v1052_v56 = vmul.f32 %v1322_v49, %v1051_v55 }
0x1141   :  { %1323 = vpow2.f32 %v1226_v43 }
0x1142   :  { %v1053_v58 = vadd.f32 %v1322_v49, %v1052_v56 }
0x1144   :  { %v1057_v60 = vsel %vm1056_vm3, %v1322_v49, %v1053_v58 }
0x1145   :  { %v1062_v48 = vsel %vm1059_vm4, %v1061_v59, %v1057_v60 }
0x1146   :  { %v1064_v33 = vmul.f32 2.0, %v1062_v48  ;;  %v1066_v9 = vmul.f32 %v1062_v48, %v1686_v21 }
0x1147   :  { %v1324_v61 = vpop.eup %1323 }
0x1148   :  { %v987_v62 = vadd.f32 1.0, %v1324_v61  ;;  %v1230_v0 = vadd.f32 -1.0, %v1064_v33 }
0x114a   :  { %1325 = vrcp.f32 %v987_v62  ;;  %1068 = vrot.lane.b32.xlu2 %v1230_v0, %s1340_s23  ;;  %v999_v5 = vand.u32 2147483648, %v987_v62  ;;  %v997_v35 = vand.u32 2147483647, %v987_v62  ;;  %vm993_vm8 = vweird.f32 %v987_v62 }
0x114c   :  { %v1000_v36 = vor.u32 1.1754944e-38, %v999_v5  ;;  %vm998_vm10 = vcmp.eq.f32.partialorder %v997_v35, 8.507059e+37 }
0x1150   :  { %v1326_v63 = vpop.eup %1325 }
0x1151   :  { %v989_v1 = vmul.f32 %v1326_v63, %v987_v62  ;;  %vm994_vm5 = vweird.f32 %v1326_v63 }
0x1152   :  { %vm995_vm9 = vmor %vm993_vm8, %vm994_vm5 }
0x1153   :  { %v990_v4 = vsub.f32 1.0, %v989_v1 }
0x1155   :  { %v991_v34 = vmul.f32 %v1326_v63, %v990_v4 }
0x1157   :  { %v992_v7 = vadd.f32 %v1326_v63, %v991_v34 }
0x1159   :  { %v996_v37 = vsel %vm995_vm9, %v1326_v63, %v992_v7 }
0x115a   :  { %v1001_v38 = vsel %vm998_vm10, %v1000_v36, %v996_v37 }
0x115b   :  { %v1003_v2 = vmul.f32 2.0, %v1001_v38  ;;  %v1005_v13 = vmul.f32 %v1001_v38, %v1682_v18 }
0x115d   :  { %v1227_v39 = vadd.f32 -1.0, %v1003_v2 }
0x115f   :  { %1007 = vrot.lane.b32.xlu1 %v1227_v39, %s1340_s23 }
0x11a4   :  { %v1069_v42 = vpop.permute.xlu2 %1068 }
0x11a5   :  { %v1071_v3 = vmul.f32 %v1069_v42, %v1062_v48 }
0x11a7   :  { %1073 = vrot.lane.b32.xlu1 %v1071_v3, %s1341_s24 }
0x11d1   :  { %v1008_v6 = vpop.permute.xlu1 %1007 }
0x11d2   :  { %v1010_v8 = vmul.f32 %v1008_v6, %v1001_v38 }
0x11d4   :  { %1012 = vrot.lane.b32.xlu0 %v1010_v8, %s1341_s24 }
0x1219   :  { %v1074_v10 = vpop.permute.xlu1 %1073 }
0x121a   :  { %v1076_v11 = vadd.f32 %v1074_v10, %v1066_v9 }
0x121c   :  { %1327 = vtanh.f32 %v1076_v11 }
0x1222   :  { %v1328_v12 = vpop.eup %1327 }
0x1223   :  { %1079 = vrot.lane.b32.xlu0 %v1328_v12, %s1340_s23 }
0x1246   :  { %v1013_v14 = vpop.permute.xlu0 %1012 }
0x1247   :  { %v1015_v15 = vadd.f32 %v1013_v14, %v1005_v13 }
0x1249   :  { %1329 = vtanh.f32 %v1015_v15 }
0x124f   :  { %v1330_v16 = vpop.eup %1329 }
0x1250   :  { %1018 = vrot.lane.b32.xlu2 %v1330_v16, %s1340_s23 }
0x1295   :  { %v1080_v17 = vpop.permute.xlu0 %1079 }
0x1296   :  { %v1082_v19 = vmul.f32 %v1080_v17, %v1062_v48 }
0x1298   :  { %1084 = vrot.lane.b32.xlu1 %v1082_v19, %s1341_s24 }
0x12aa   :  { %v1019_v20 = vpop.permute.xlu2 %1018 }
0x12ab   :  { %v1021_v21 = vmul.f32 %v1019_v20, %v1001_v38 }
0x12ad   :  { %1088 = vrot.lane.b32.xlu2 %v1021_v21, %s1340_s23 }
0x1307   :  { %v1089_v22 = vpop.permute.xlu2 %1088 }
0x130a   :  { %v1085_v23 = vpop.permute.xlu1 %1084 }
0x130b   :  { %v1091_v24 = vsel %vm105_vm6, %v1085_v23, %v1089_v22 }
0x130c   :  { %1231 = vmatmul.msk.f32.vlgmr.msrb.gmra.mxu0 %vm174_vm7, %v1091_v24 }
0x1389   :  { %v1112_v18 = vpop.f32.mrf.mxu0 }
0x138a   :  { %v1113_v26 = vadd.f32 %v1704_v54, %v1112_v18 }
0x138c   :  { %v1232_v27 = vmul.f32 -1.442695, %v1113_v26 }
0x138e   :  { %1331 = vpow2.f32 %v1232_v27 }
0x1394   :  { %v1332_v28 = vpop.eup %1331 }
0x1395   :  { %v1118_v25 = vadd.f32 1.0, %v1332_v28 }
0x1397   :  { %1333 = vrcp.f32 %v1118_v25  ;;  %v1130_v41 = vand.u32 2147483648, %v1118_v25  ;;  %v1128_v47 = vand.u32 2147483647, %v1118_v25  ;;  %vm1124_vm12 = vweird.f32 %v1118_v25 }
0x1399   :  { %v1131_v50 = vor.u32 1.1754944e-38, %v1130_v41  ;;  %vm1129_vm7 = vcmp.eq.f32.partialorder %v1128_v47, 8.507059e+37 }
0x139d   :  { %v1334_v29 = vpop.eup %1333 }
0x139e   :  { %v1120_v32 = vmul.f32 %v1334_v29, %v1118_v25  ;;  %vm1125_vm11 = vweird.f32 %v1334_v29 }
0x139f   :  { %vm1126_vm13 = vmor %vm1124_vm12, %vm1125_vm11 }
0x13a0   :  { %v1121_v40 = vsub.f32 1.0, %v1120_v32 }
0x13a2   :  { %v1122_v46 = vmul.f32 %v1334_v29, %v1121_v40 }
0x13a4   :  { %v1123_v44 = vadd.f32 %v1334_v29, %v1122_v46 }
0x13a6   :  { %v1127_v52 = vsel %vm1126_vm13, %v1334_v29, %v1123_v44 }
0x13a7   :  { %v1132_v53 = vsel %vm1129_vm7, %v1131_v50, %v1127_v52 }
0x13a8   :  { %v1134_v49 = vmul.f32 2.0, %v1132_v53  ;;  %v1136_v55 = vmul.f32 %v1132_v53, %v1015_v15 }
0x13aa   :  { %v1233_v45 = vadd.f32 -1.0, %v1134_v49 }
0x13ac   :  { %1138 = vrot.lane.b32.xlu0 %v1233_v45, %s1340_s23 }
0x13b4   :  { %1156 = vrot.lane.b32.xlu0 %v1240_v31, %s1342_s8 }
0x141e   :  { %v1139_v54 = vpop.permute.xlu0 %1138 }
0x141f   :  { %v1141_v51 = vmul.f32 %v1139_v54, %v1132_v53 }
0x1421   :  { %1143 = vrot.lane.b32.xlu1 %v1141_v51, %s1341_s24 }
0x1426   :  { %v1157_v58 = vpop.permute.xlu0 %1156 }
0x1493   :  { %v1144_v43 = vpop.permute.xlu1 %1143 }
0x1494   :  { %v1146_v30 = vadd.f32 %v1144_v43, %v1136_v55 }
0x1496   :  { %1335 = vtanh.f32 %v1146_v30 }
0x149c   :  { %v1336_v56 = vpop.eup %1335 }
0x149d   :  { %1149 = vrot.lane.b32.xlu2 %v1336_v56, %s1340_s23 }
0x14f7   :  { %v1150_v57 = vpop.permute.xlu2 %1149 }
0x14f8   :  { %v1152_v59 = vmul.f32 %v1150_v57, %v1132_v53 }
0x14fa   :  { %v1159_v60 = vmul.f32 %v1157_v58, %v1152_v59 }
0x14fc   :  { %1161 = vrot.lane.b32.xlu1 %v1159_v60, %s1341_s24 }
0x156e   :  { %v1162_v48 = vpop.permute.xlu1 %1161 }
0x156f   :  { %v1164_v33 = vsel %vm105_vm6, %v1162_v48, 0.0 }
0x1570   :  { %1165 = vadd.xlane.f32.xlu2 %v1164_v33 }
0x15e3   :  { %v1166_v61 = vpop.xlane.xlu2 %1165 }
0x15e4   :  { %v1167_v62 = vadd.f32 %v1240_v31, %v1166_v61 }
0x15e6   :  { %1169 = vrot.lane.b32.xlu0 %v1167_v62, %s1342_s8 }
0x1658   :  { %v1170_v0 = vpop.permute.xlu0 %1169 }
0x1659   :  { %1173 = vst.msk [vmem:[%s1733_s2] sm:$0xff] %vm1172_vm14, %v1170_v0 }

</bundles_post_ra>
